<compile_context>
chip_gen: v6e
topology: v6e:2x2x1
jax: 0.10.0
libtpu: 0.0.40
codegen_flags: <defaults>
</compile_context>

<pallas_src>
import jax
import jax.numpy as jnp
from jax.experimental import pallas as pl
from jax.experimental.pallas import tpu as pltpu


# ---------------------------------------------------------------------------
# Pallas kernels
# ---------------------------------------------------------------------------
_PARALLEL = pltpu.CompilerParams(dimension_semantics=("parallel",))


def conv_bn_pool_relu_kernel(p_ref, w_ref, shift_ref, o_ref):
    # p_ref:  (T * 4 * P, C*K*K) im2col rows ordered (image, corner, window)
    # w_ref:  (C*K*K, Cout)  with BN scale already folded into the columns
    # shift:  (1, Cout)      folded BN shift (includes conv bias)
    # o_ref:  (T, P, Cout)   pooled + ReLU'd channels-last activations
    t, pool_p, cout = o_ref.shape
    y = jnp.dot(p_ref[...], w_ref[...], preferred_element_type=jnp.float32)
    y = y + shift_ref[...]                      # BN affine (per-element, pre-pool)
    y = y.reshape(t, 4, pool_p, cout)           # regroup rows: (img, corner, win)
    m = jnp.maximum(jnp.maximum(y[:, 0], y[:, 1]),
                    jnp.maximum(y[:, 2], y[:, 3]))      # 2x2 max-pool
    o_ref[...] = jnp.maximum(m, 0.0)                    # ReLU


def mlp_head_kernel(x_ref, w1_ref, b1_ref, w2_ref, b2_ref, o_ref):
    h = jnp.dot(x_ref[...], w1_ref[...], preferred_element_type=jnp.float32)
    h = jnp.maximum(h + b1_ref[...], 0.0)
    # TODO(synk): F.dropout(training=True) not reproduced; eval-mode identity.
    logits = jnp.dot(h, w2_ref[...], preferred_element_type=jnp.float32) + b2_ref[...]
    s = logits - jnp.max(logits, axis=-1, keepdims=True)
    o_ref[...] = s - jnp.log(jnp.sum(jnp.exp(s), axis=-1, keepdims=True))


# ---------------------------------------------------------------------------
# pallas_call wrappers (1-D grid over the batch, parallel for v7x megacore)
# ---------------------------------------------------------------------------
def conv_bn_pool_relu(patches, wmat, shift, *, n_img, pool_p, img_tile):
    ckk = patches.shape[1]
    cout = wmat.shape[1]
    return pl.pallas_call(
        conv_bn_pool_relu_kernel,
        out_shape=jax.ShapeDtypeStruct((n_img, pool_p, cout), jnp.float32),
        grid=(pl.cdiv(n_img, img_tile),),
        in_specs=[
            pl.BlockSpec((img_tile * 4 * pool_p, ckk), lambda i: (i, 0)),
            pl.BlockSpec(wmat.shape, lambda i: (0, 0)),
            pl.BlockSpec(shift.shape, lambda i: (0, 0)),
        ],
        out_specs=pl.BlockSpec((img_tile, pool_p, cout), lambda i: (i, 0, 0)),
        compiler_params=_PARALLEL,
    )(patches, wmat, shift)


def mlp_head(x, w1, b1, w2, b2, *, row_tile):
    n, feat = x.shape
    nout = w2.shape[1]
    return pl.pallas_call(
        mlp_head_kernel,
        out_shape=jax.ShapeDtypeStruct((n, nout), jnp.float32),
        grid=(pl.cdiv(n, row_tile),),
        in_specs=[
            pl.BlockSpec((row_tile, feat), lambda i: (i, 0)),
            pl.BlockSpec(w1.shape, lambda i: (0, 0)),
            pl.BlockSpec(b1.shape, lambda i: (0, 0)),
            pl.BlockSpec(w2.shape, lambda i: (0, 0)),
            pl.BlockSpec(b2.shape, lambda i: (0, 0)),
        ],
        out_specs=pl.BlockSpec((row_tile, nout), lambda i: (i, 0)),
        compiler_params=_PARALLEL,
    )(x, w1, b1, w2, b2)


# ---------------------------------------------------------------------------
# plain-JAX glue: layout only (im2col with pool-corner grouping, weight prep)
# ---------------------------------------------------------------------------
def corner_patches(x_cl, k):
    """x_cl: (N, H, W, C) channels-last.
    Returns (N * 4 * (Ho//2)*(Wo//2), k*k*C) im2col patches whose rows are
    ordered (image, 2x2-pool corner, pool window); columns ordered (ki,kj,c)."""
    n, h, w, c = x_cl.shape
    ho, wo = h - k + 1, w - k + 1
    hp, wp = ho // 2, wo // 2
    cols = [x_cl[:, ki:ki + ho, kj:kj + wo, :]
            for ki in range(k) for kj in range(k)]
    p = jnp.stack(cols, axis=3)                    # (N, Ho, Wo, k*k, C)
    p = p.reshape(n, ho, wo, k * k * c)
    p = p.reshape(n, hp, 2, wp, 2, k * k * c)
    p = p.transpose(0, 2, 4, 1, 3, 5)              # (N, dh, dw, hp, wp, CKK)
    return p.reshape(n * 4 * hp * wp, k * k * c)


def fold_conv_bn(w, b, gamma, beta, mean, var, eps=1e-5):
    """Torch conv weight (Cout,Cin,K,K) + eval-mode BN folded into a
    (K*K*Cin, Cout) matmul weight (row order ki,kj,cin) and a (1,Cout) shift."""
    cout, cin, k, _ = w.shape
    wmat = w.transpose(2, 3, 1, 0).reshape(k * k * cin, cout)
    scale = gamma / jnp.sqrt(var + eps)
    return wmat * scale[None, :], (beta + scale * (b - mean)).reshape(1, -1)


def prep_head_weights(params):
    # fc1 consumes the (h, w, c)-ordered flatten of the channels-last pooled
    # activations; torch's .view(-1, 320) on NCHW is (c, h, w)-ordered, so
    # permute fc1's columns once host-side (zero runtime cost).
    w1 = params['fc1_w'].reshape(50, 20, 4, 4).transpose(2, 3, 1, 0).reshape(320, 50)
    b1 = params['fc1_b'].reshape(1, -1)
    w2 = params['fc2_w'].T
    b2 = params['fc2_b'].reshape(1, -1)
    return w1, b1, w2, b2


def net_forward(x, params):
    n = x.shape[0]
    img_tile = 1 if n < 8 else 8          # per-step VMEM stays < ~1 MiB
    row_tile = n if n <= 128 else 128

    # conv1 (1->10, k=5) + bn1 + maxpool(2) + relu   (one fused kernel)
    x_cl = x.reshape(n, 28, 28, 1)                         # NCHW->NHWC free (C==1)
    w1m, shift1 = fold_conv_bn(params['conv1_w'], params['conv1_b'],
                               params['bn1_g'], params['bn1_b'],
                               params['bn1_mean'], params['bn1_var'])
    p1 = corner_patches(x_cl, 5)                           # (N*4*144, 25)
    h1 = conv_bn_pool_relu(p1, w1m, shift1, n_img=n, pool_p=144,
                           img_tile=img_tile)              # (N, 144, 10)

    # conv2 (10->20, k=5) + bn2 + maxpool(2) + relu  (one fused kernel)
    # TODO(synk): nn.Dropout2d training-mode channel dropout (PyTorch RNG) is
    # not reproduced; eval-mode identity.
    w2m, shift2 = fold_conv_bn(params['conv2_w'], params['conv2_b'],
                               params['bn2_g'], params['bn2_b'],
                               params['bn2_mean'], params['bn2_var'])
    p2 = corner_patches(h1.reshape(n, 12, 12, 10), 5)      # (N*4*16, 250)
    h2 = conv_bn_pool_relu(p2, w2m, shift2, n_img=n, pool_p=16,
                           img_tile=img_tile)              # (N, 16, 20)

    # fc1 -> relu -> (dropout: identity) -> fc2 -> log_softmax (fused kernel)
    flat = h2.reshape(n, 320)                              # (h,w,c) order; free
    fw1, fb1, fw2, fb2 = prep_head_weights(params)
    return mlp_head(flat, fw1, fb1, fw2, fb2, row_tile=row_tile)


# ---------------------------------------------------------------------------
# pure-JAX reference (same eval-mode semantics) for a correctness check
# ---------------------------------------------------------------------------
def net_reference(x, params, eps=1e-5):
    def conv(z, w, b):
        y = jax.lax.conv_general_dilated(
            z, w, window_strides=(1, 1), padding='VALID',
            dimension_numbers=('NCHW', 'OIHW', 'NCHW'))
        return y + b[None, :, None, None]

    def bn(z, g, b, m, v):
        return (z - m[None, :, None, None]) / jnp.sqrt(v[None, :, None, None] + eps) \
            * g[None, :, None, None] + b[None, :, None, None]

    def pool(z):
        return jax.lax.reduce_window(z, -jnp.inf, jax.lax.max,
                                     (1, 1, 2, 2), (1, 1, 2, 2), 'VALID')

    y = bn(conv(x, params['conv1_w'], params['conv1_b']),
           params['bn1_g'], params['bn1_b'], params['bn1_mean'], params['bn1_var'])
    y = jax.nn.relu(pool(y))
    y = bn(conv(y, params['conv2_w'], params['conv2_b']),
           params['bn2_g'], params['bn2_b'], params['bn2_mean'], params['bn2_var'])
    y = jax.nn.relu(pool(y))
    y = y.reshape(-1, 320)
    y = jax.nn.relu(y @ params['fc1_w'].T + params['fc1_b'])
    y = y @ params['fc2_w'].T + params['fc2_b']
    return jax.nn.log_softmax(y, axis=-1)


# ---------------------------------------------------------------------------
# deterministic parameter init (synthetic; shapes match the nn.Module)
# ---------------------------------------------------------------------------
def init_params(key):
    ks = jax.random.split(key, 12)
    n = lambda k, s, sc=0.1: (sc * jax.random.normal(k, s)).astype(jnp.float32)
    return {
        'conv1_w': n(ks[0], (10, 1, 5, 5)),
        'conv1_b': n(ks[1], (10,)),
        'bn1_g': 1.0 + n(ks[2], (10,)),
        'bn1_b': n(ks[3], (10,)),
        'bn1_mean': n(ks[4], (10,)),
        'bn1_var': jnp.abs(n(ks[5], (10,))) + 1.0,
        'conv2_w': n(ks[6], (20, 10, 5, 5)),
        'conv2_b': n(ks[7], (20,)),
        'bn2_g': 1.0 + n(ks[8], (20,)),
        'bn2_b': n(ks[9], (20,)),
        'bn2_mean': n(ks[10], (20,)),
        'bn2_var': jnp.abs(n(ks[11], (20,))) + 1.0,
        'fc1_w': n(jax.random.fold_in(key, 100), (50, 320)),
        'fc1_b': n(jax.random.fold_in(key, 101), (50,)),
        'fc2_w': n(jax.random.fold_in(key, 102), (10, 50)),
        'fc2_b': n(jax.random.fold_in(key, 103), (10,)),
    }


if __name__ == "__main__":
    key = jax.random.PRNGKey(0)
    kx, kp = jax.random.split(key)
    # MNIST-shaped input (28x28 is required by the .view(-1, 320) in forward)
    x = jax.random.normal(kx, (2, 1, 28, 28), dtype=jnp.float32)
    params = init_params(kp)

    out = jax.jit(net_forward)(x, params)
    out = jax.block_until_ready(out)
    assert out.shape == (2, 10) and out.dtype == jnp.float32

    ref = net_reference(x, params)
    assert bool(jnp.max(jnp.abs(out - ref)) < 1e-3)
    # log_softmax rows should exp-sum to ~1
    assert bool(jnp.all(jnp.abs(jnp.sum(jnp.exp(out), axis=-1) - 1.0) < 1e-4))
    print("KERNEL_OK")
</pallas_src>

<mosaic_0001>
module attributes {stable_mosaic.version = 11 : i64} {
  func.func @conv_bn_pool_relu_kernel(%arg0: i32, %arg1: memref<576x25xf32, #tpu.memory_space<vmem>>, %arg2: memref<25x10xf32, #tpu.memory_space<vmem>>, %arg3: memref<1x10xf32, #tpu.memory_space<vmem>>, %arg4: memref<1x144x10xf32, #tpu.memory_space<vmem>>) attributes {dimension_semantics = [#tpu.dimension_semantics<parallel>], iteration_bounds = array<i64: 2>, scalar_prefetch = 0 : i64, scratch_operands = 0 : i64, tpu.core_type = #tpu.core_type<tc>, window_params = [{transform_indices = @transform_0, window_bounds = array<i64: 576, 25>}, {pipeline_mode = #tpu.pipeline_mode<synchronous>, transform_indices = @transform_1, window_bounds = array<i64: 25, 10>}, {pipeline_mode = #tpu.pipeline_mode<synchronous>, transform_indices = @transform_2, window_bounds = array<i64: 1, 10>}, {transform_indices = @transform_3, window_bounds = array<i64: 1, 144, 10>}]} {
    %c0 = arith.constant 0 : index
    %c0_0 = arith.constant 0 : index
    %0 = vector.load %arg1[%c0, %c0_0] : memref<576x25xf32, #tpu.memory_space<vmem>>, vector<576x25xf32>
    %c0_1 = arith.constant 0 : index
    %c0_2 = arith.constant 0 : index
    %1 = vector.load %arg2[%c0_1, %c0_2] : memref<25x10xf32, #tpu.memory_space<vmem>>, vector<25x10xf32>
    %cst = arith.constant dense<0.000000e+00> : vector<576x10xf32>
    %2 = tpu.matmul %0, %1, %cst {dimension_numbers = #tpu.dot_dimension_numbers<[1], [0], [0], [1], [0, 0, 1, 1], [], []>} : vector<576x25xf32>, vector<25x10xf32>, vector<576x10xf32> -> vector<576x10xf32>
    %c0_3 = arith.constant 0 : index
    %c0_4 = arith.constant 0 : index
    %3 = vector.load %arg3[%c0_3, %c0_4] : memref<1x10xf32, #tpu.memory_space<vmem>>, vector<1x10xf32>
    %4 = vector.broadcast %3 : vector<1x10xf32> to vector<576x10xf32>
    %5 = arith.addf %2, %4 : vector<576x10xf32>
    %6 = vector.shape_cast %5 : vector<576x10xf32> to vector<1x4x144x10xf32>
    %7 = vector.extract_strided_slice %6 {offsets = [0, 0, 0, 0], sizes = [1, 1, 144, 10], strides = [1, 1, 1, 1]} : vector<1x4x144x10xf32> to vector<1x1x144x10xf32>
    %8 = vector.shape_cast %7 : vector<1x1x144x10xf32> to vector<1x144x10xf32>
    %9 = vector.extract_strided_slice %6 {offsets = [0, 1, 0, 0], sizes = [1, 1, 144, 10], strides = [1, 1, 1, 1]} : vector<1x4x144x10xf32> to vector<1x1x144x10xf32>
    %10 = vector.shape_cast %9 : vector<1x1x144x10xf32> to vector<1x144x10xf32>
    %11 = arith.maximumf %8, %10 : vector<1x144x10xf32>
    %12 = vector.extract_strided_slice %6 {offsets = [0, 2, 0, 0], sizes = [1, 1, 144, 10], strides = [1, 1, 1, 1]} : vector<1x4x144x10xf32> to vector<1x1x144x10xf32>
    %13 = vector.shape_cast %12 : vector<1x1x144x10xf32> to vector<1x144x10xf32>
    %14 = vector.extract_strided_slice %6 {offsets = [0, 3, 0, 0], sizes = [1, 1, 144, 10], strides = [1, 1, 1, 1]} : vector<1x4x144x10xf32> to vector<1x1x144x10xf32>
    %15 = vector.shape_cast %14 : vector<1x1x144x10xf32> to vector<1x144x10xf32>
    %16 = arith.maximumf %13, %15 : vector<1x144x10xf32>
    %17 = arith.maximumf %11, %16 : vector<1x144x10xf32>
    %cst_5 = arith.constant 0.000000e+00 : f32
    %18 = vector.broadcast %cst_5 : f32 to vector<1x144x10xf32>
    %19 = arith.maximumf %17, %18 : vector<1x144x10xf32>
    %c0_6 = arith.constant 0 : index
    %c0_7 = arith.constant 0 : index
    %c0_8 = arith.constant 0 : index
    %20 = vector.load %arg4[%c0_6, %c0_7, %c0_8] : memref<1x144x10xf32, #tpu.memory_space<vmem>>, vector<1x144x10xf32>
    tpu.vector_store %arg4[%c0_6, %c0_7, %c0_8], %19 {strides = array<i32>} : memref<1x144x10xf32, #tpu.memory_space<vmem>>, vector<1x144x10xf32>,
    return
  }
  func.func @transform_0(%arg0: i32) -> (i32, i32) {
    %c0_i32 = arith.constant 0 : i32
    %c0_i32_0 = arith.constant 0 : i32
    return %arg0, %c0_i32 : i32, i32
  }
  func.func @transform_1(%arg0: i32) -> (i32, i32) {
    %c0_i32 = arith.constant 0 : i32
    %c0_i32_0 = arith.constant 0 : i32
    %c0_i32_1 = arith.constant 0 : i32
    return %c0_i32, %c0_i32_0 : i32, i32
  }
  func.func @transform_2(%arg0: i32) -> (i32, i32) {
    %c0_i32 = arith.constant 0 : i32
    %c0_i32_0 = arith.constant 0 : i32
    %c0_i32_1 = arith.constant 0 : i32
    return %c0_i32, %c0_i32_0 : i32, i32
  }
  func.func @transform_3(%arg0: i32) -> (i32, i32, i32) {
    %c0_i32 = arith.constant 0 : i32
    %c0_i32_0 = arith.constant 0 : i32
    %c0_i32_1 = arith.constant 0 : i32
    return %arg0, %c0_i32, %c0_i32_0 : i32, i32, i32
  }
}

module attributes {stable_mosaic.version = 11 : i64} {
  func.func @conv_bn_pool_relu_kernel(%arg0: i32, %arg1: memref<64x250xf32, #tpu.memory_space<vmem>>, %arg2: memref<250x20xf32, #tpu.memory_space<vmem>>, %arg3: memref<1x20xf32, #tpu.memory_space<vmem>>, %arg4: memref<1x16x20xf32, #tpu.memory_space<vmem>>) attributes {dimension_semantics = [#tpu.dimension_semantics<parallel>], iteration_bounds = array<i64: 2>, scalar_prefetch = 0 : i64, scratch_operands = 0 : i64, tpu.core_type = #tpu.core_type<tc>, window_params = [{transform_indices = @transform_0, window_bounds = array<i64: 64, 250>}, {pipeline_mode = #tpu.pipeline_mode<synchronous>, transform_indices = @transform_1, window_bounds = array<i64: 250, 20>}, {pipeline_mode = #tpu.pipeline_mode<synchronous>, transform_indices = @transform_2, window_bounds = array<i64: 1, 20>}, {transform_indices = @transform_3, window_bounds = array<i64: 1, 16, 20>}]} {
    %c0 = arith.constant 0 : index
    %c0_0 = arith.constant 0 : index
    %0 = vector.load %arg1[%c0, %c0_0] : memref<64x250xf32, #tpu.memory_space<vmem>>, vector<64x250xf32>
    %c0_1 = arith.constant 0 : index
    %c0_2 = arith.constant 0 : index
    %1 = vector.load %arg2[%c0_1, %c0_2] : memref<250x20xf32, #tpu.memory_space<vmem>>, vector<250x20xf32>
    %cst = arith.constant dense<0.000000e+00> : vector<64x20xf32>
    %2 = tpu.matmul %0, %1, %cst {dimension_numbers = #tpu.dot_dimension_numbers<[1], [0], [0], [1], [0, 0, 1, 1], [], []>} : vector<64x250xf32>, vector<250x20xf32>, vector<64x20xf32> -> vector<64x20xf32>
    %c0_3 = arith.constant 0 : index
    %c0_4 = arith.constant 0 : index
    %3 = vector.load %arg3[%c0_3, %c0_4] : memref<1x20xf32, #tpu.memory_space<vmem>>, vector<1x20xf32>
    %4 = vector.broadcast %3 : vector<1x20xf32> to vector<64x20xf32>
    %5 = arith.addf %2, %4 : vector<64x20xf32>
    %6 = vector.shape_cast %5 : vector<64x20xf32> to vector<1x4x16x20xf32>
    %7 = vector.extract_strided_slice %6 {offsets = [0, 0, 0, 0], sizes = [1, 1, 16, 20], strides = [1, 1, 1, 1]} : vector<1x4x16x20xf32> to vector<1x1x16x20xf32>
    %8 = vector.shape_cast %7 : vector<1x1x16x20xf32> to vector<1x16x20xf32>
    %9 = vector.extract_strided_slice %6 {offsets = [0, 1, 0, 0], sizes = [1, 1, 16, 20], strides = [1, 1, 1, 1]} : vector<1x4x16x20xf32> to vector<1x1x16x20xf32>
    %10 = vector.shape_cast %9 : vector<1x1x16x20xf32> to vector<1x16x20xf32>
    %11 = arith.maximumf %8, %10 : vector<1x16x20xf32>
    %12 = vector.extract_strided_slice %6 {offsets = [0, 2, 0, 0], sizes = [1, 1, 16, 20], strides = [1, 1, 1, 1]} : vector<1x4x16x20xf32> to vector<1x1x16x20xf32>
    %13 = vector.shape_cast %12 : vector<1x1x16x20xf32> to vector<1x16x20xf32>
    %14 = vector.extract_strided_slice %6 {offsets = [0, 3, 0, 0], sizes = [1, 1, 16, 20], strides = [1, 1, 1, 1]} : vector<1x4x16x20xf32> to vector<1x1x16x20xf32>
    %15 = vector.shape_cast %14 : vector<1x1x16x20xf32> to vector<1x16x20xf32>
    %16 = arith.maximumf %13, %15 : vector<1x16x20xf32>
    %17 = arith.maximumf %11, %16 : vector<1x16x20xf32>
    %cst_5 = arith.constant 0.000000e+00 : f32
    %18 = vector.broadcast %cst_5 : f32 to vector<1x16x20xf32>
    %19 = arith.maximumf %17, %18 : vector<1x16x20xf32>
    %c0_6 = arith.constant 0 : index
    %c0_7 = arith.constant 0 : index
    %c0_8 = arith.constant 0 : index
    %20 = vector.load %arg4[%c0_6, %c0_7, %c0_8] : memref<1x16x20xf32, #tpu.memory_space<vmem>>, vector<1x16x20xf32>
    tpu.vector_store %arg4[%c0_6, %c0_7, %c0_8], %19 {strides = array<i32>} : memref<1x16x20xf32, #tpu.memory_space<vmem>>, vector<1x16x20xf32>,
    return
  }
  func.func @transform_0(%arg0: i32) -> (i32, i32) {
    %c0_i32 = arith.constant 0 : i32
    %c0_i32_0 = arith.constant 0 : i32
    return %arg0, %c0_i32 : i32, i32
  }
  func.func @transform_1(%arg0: i32) -> (i32, i32) {
    %c0_i32 = arith.constant 0 : i32
    %c0_i32_0 = arith.constant 0 : i32
    %c0_i32_1 = arith.constant 0 : i32
    return %c0_i32, %c0_i32_0 : i32, i32
  }
  func.func @transform_2(%arg0: i32) -> (i32, i32) {
    %c0_i32 = arith.constant 0 : i32
    %c0_i32_0 = arith.constant 0 : i32
    %c0_i32_1 = arith.constant 0 : i32
    return %c0_i32, %c0_i32_0 : i32, i32
  }
  func.func @transform_3(%arg0: i32) -> (i32, i32, i32) {
    %c0_i32 = arith.constant 0 : i32
    %c0_i32_0 = arith.constant 0 : i32
    %c0_i32_1 = arith.constant 0 : i32
    return %arg0, %c0_i32, %c0_i32_0 : i32, i32, i32
  }
}

module attributes {stable_mosaic.version = 11 : i64} {
  func.func @mlp_head_kernel(%arg0: i32, %arg1: memref<2x320xf32, #tpu.memory_space<vmem>>, %arg2: memref<320x50xf32, #tpu.memory_space<vmem>>, %arg3: memref<1x50xf32, #tpu.memory_space<vmem>>, %arg4: memref<50x10xf32, #tpu.memory_space<vmem>>, %arg5: memref<1x10xf32, #tpu.memory_space<vmem>>, %arg6: memref<2x10xf32, #tpu.memory_space<vmem>>) attributes {dimension_semantics = [#tpu.dimension_semantics<parallel>], iteration_bounds = array<i64: 1>, scalar_prefetch = 0 : i64, scratch_operands = 0 : i64, tpu.core_type = #tpu.core_type<tc>, window_params = [{transform_indices = @transform_0, window_bounds = array<i64: 2, 320>}, {pipeline_mode = #tpu.pipeline_mode<synchronous>, transform_indices = @transform_1, window_bounds = array<i64: 320, 50>}, {pipeline_mode = #tpu.pipeline_mode<synchronous>, transform_indices = @transform_2, window_bounds = array<i64: 1, 50>}, {pipeline_mode = #tpu.pipeline_mode<synchronous>, transform_indices = @transform_3, window_bounds = array<i64: 50, 10>}, {pipeline_mode = #tpu.pipeline_mode<synchronous>, transform_indices = @transform_4, window_bounds = array<i64: 1, 10>}, {transform_indices = @transform_5, window_bounds = array<i64: 2, 10>}]} {
    %c0 = arith.constant 0 : index
    %c0_0 = arith.constant 0 : index
    %0 = vector.load %arg1[%c0, %c0_0] : memref<2x320xf32, #tpu.memory_space<vmem>>, vector<2x320xf32>
    %c0_1 = arith.constant 0 : index
    %c0_2 = arith.constant 0 : index
    %1 = vector.load %arg2[%c0_1, %c0_2] : memref<320x50xf32, #tpu.memory_space<vmem>>, vector<320x50xf32>
    %cst = arith.constant dense<0.000000e+00> : vector<2x50xf32>
    %2 = tpu.matmul %0, %1, %cst {dimension_numbers = #tpu.dot_dimension_numbers<[1], [0], [0], [1], [0, 0, 1, 1], [], []>} : vector<2x320xf32>, vector<320x50xf32>, vector<2x50xf32> -> vector<2x50xf32>
    %c0_3 = arith.constant 0 : index
    %c0_4 = arith.constant 0 : index
    %3 = vector.load %arg3[%c0_3, %c0_4] : memref<1x50xf32, #tpu.memory_space<vmem>>, vector<1x50xf32>
    %4 = vector.broadcast %3 : vector<1x50xf32> to vector<2x50xf32>
    %5 = arith.addf %2, %4 : vector<2x50xf32>
    %cst_5 = arith.constant 0.000000e+00 : f32
    %6 = vector.broadcast %cst_5 : f32 to vector<2x50xf32>
    %7 = arith.maximumf %5, %6 : vector<2x50xf32>
    %c0_6 = arith.constant 0 : index
    %c0_7 = arith.constant 0 : index
    %8 = vector.load %arg4[%c0_6, %c0_7] : memref<50x10xf32, #tpu.memory_space<vmem>>, vector<50x10xf32>
    %cst_8 = arith.constant dense<0.000000e+00> : vector<2x10xf32>
    %9 = tpu.matmul %7, %8, %cst_8 {dimension_numbers = #tpu.dot_dimension_numbers<[1], [0], [0], [1], [0, 0, 1, 1], [], []>} : vector<2x50xf32>, vector<50x10xf32>, vector<2x10xf32> -> vector<2x10xf32>
    %c0_9 = arith.constant 0 : index
    %c0_10 = arith.constant 0 : index
    %10 = vector.load %arg5[%c0_9, %c0_10] : memref<1x10xf32, #tpu.memory_space<vmem>>, vector<1x10xf32>
    %11 = vector.broadcast %10 : vector<1x10xf32> to vector<2x10xf32>
    %12 = arith.addf %9, %11 : vector<2x10xf32>
    %cst_11 = arith.constant dense<0xFF800000> : vector<2xf32>
    %13 = vector.multi_reduction <maximumf>, %12, %cst_11 [1] : vector<2x10xf32> to vector<2xf32>
    %14 = vector.shape_cast %13 : vector<2xf32> to vector<2x1xf32>
    %15 = vector.broadcast %14 : vector<2x1xf32> to vector<2x10xf32>
    %16 = arith.subf %12, %15 : vector<2x10xf32>
    %17 = math.exp %16 : vector<2x10xf32>
    %cst_12 = arith.constant dense<0.000000e+00> : vector<2xf32>
    %18 = vector.multi_reduction <add>, %17, %cst_12 [1] : vector<2x10xf32> to vector<2xf32>
    %19 = vector.shape_cast %18 : vector<2xf32> to vector<2x1xf32>
    %20 = math.log %19 : vector<2x1xf32>
    %21 = vector.broadcast %20 : vector<2x1xf32> to vector<2x10xf32>
    %22 = arith.subf %16, %21 : vector<2x10xf32>
    %c0_13 = arith.constant 0 : index
    %c0_14 = arith.constant 0 : index
    %23 = vector.load %arg6[%c0_13, %c0_14] : memref<2x10xf32, #tpu.memory_space<vmem>>, vector<2x10xf32>
    tpu.vector_store %arg6[%c0_13, %c0_14], %22 {strides = array<i32>} : memref<2x10xf32, #tpu.memory_space<vmem>>, vector<2x10xf32>,
    return
  }
  func.func @transform_0(%arg0: i32) -> (i32, i32) {
    %c0_i32 = arith.constant 0 : i32
    %c0_i32_0 = arith.constant 0 : i32
    return %arg0, %c0_i32 : i32, i32
  }
  func.func @transform_1(%arg0: i32) -> (i32, i32) {
    %c0_i32 = arith.constant 0 : i32
    %c0_i32_0 = arith.constant 0 : i32
    %c0_i32_1 = arith.constant 0 : i32
    return %c0_i32, %c0_i32_0 : i32, i32
  }
  func.func @transform_2(%arg0: i32) -> (i32, i32) {
    %c0_i32 = arith.constant 0 : i32
    %c0_i32_0 = arith.constant 0 : i32
    %c0_i32_1 = arith.constant 0 : i32
    return %c0_i32, %c0_i32_0 : i32, i32
  }
  func.func @transform_3(%arg0: i32) -> (i32, i32) {
    %c0_i32 = arith.constant 0 : i32
    %c0_i32_0 = arith.constant 0 : i32
    %c0_i32_1 = arith.constant 0 : i32
    return %c0_i32, %c0_i32_0 : i32, i32
  }
  func.func @transform_4(%arg0: i32) -> (i32, i32) {
    %c0_i32 = arith.constant 0 : i32
    %c0_i32_0 = arith.constant 0 : i32
    %c0_i32_1 = arith.constant 0 : i32
    return %c0_i32, %c0_i32_0 : i32, i32
  }
  func.func @transform_5(%arg0: i32) -> (i32, i32) {
    %c0_i32 = arith.constant 0 : i32
    %c0_i32_0 = arith.constant 0 : i32
    return %arg0, %c0_i32 : i32, i32
  }
}

</mosaic_0001>

<bundles_post_ra>
// kernel: net_forward.3
= control target key start
LH: loop header
LB: loop body
LE: loop exit
PB: predicated region body
PF: predicated region fallthrough
CT: control target
= control target key end

     0   :  { %s1368_s12 = smov 0   ;;  %s1747_s0 = inlined_call_operand.vmem [shape: f32[1152,25], index: 0, kind: input, shape index: {}]   ;;  %s1748_s1 = inlined_call_operand.vmem [shape: f32[25,10], index: 1, kind: input, shape index: {}]   ;;  %s1749_s2 = inlined_call_operand.vmem [shape: f32[1,10], index: 2, kind: input, shape index: {}]   ;;  %s1750_s3 = inlined_call_operand.vmem [shape: f32[2,144,10], index: 3, kind: output, shape index: {}]  }
   0x1 LB: > { %s1374_s13 = sadd.s32 4294967295, %s1346_s12   ;;  %p1052_p0 = scmp.ge.s32.totalorder %s1346_s12, 1  ;;  %s1346_s12 = sphi %s1368_s12, %s13_s12  }
   0x2   : > { %p138_p1 = scmp.lt.s32.totalorder %s1346_s12, 3 }
   0x4   : > { %p139_p2 = pnand %p1052_p0, %p138_p1 }
   0x5   : > { %s162_s18 = smul.u32 (!%p139_p2), 72, %s1374_s13  ;;  %p168_p4 = scmp.lt.s32.totalorder (!%p139_p2), %s1374_s13, 1 }
   0x6   : > { %142 = sbr.rel (%p139_p2) target bundleno = 293 (0x125), region = 32 }
   0x7   : > { %p163_p3 = scmp.lt.s32.totalorder (!%p139_p2), %s162_s18, 143 }
   0xb   : > { %v248_v0 = vld [vmem:[%s1748_s1 + $0x18] sm:$0x1]  ;;  %vm473_vm0 = vcmask 1040384   ;;  %v247_v1 = vld [vmem:[%s1748_s1 + $0x10] sm:$0xff]  ;;  %v246_v2 = vld [vmem:[%s1748_s1 + $0x8] sm:$0xff]  ;;  %s1752_s18 = smov (!%p163_p3, %s162_s18), 143 }
   0xc   : > { %1207 = vmatprep.subr.msk.mxu0 %vm473_vm0, %v248_v0  ;;  %1323 = vmatprep.subr.msk.mxu1 %vm473_vm0, %v248_v0  ;;  %v245_v3 = vld [vmem:[%s1748_s1] sm:$0xff]  ;;  %s1053_s23 = sshll.u32 %s1752_s18, 3  ;;  %vm256_vm1 = vcmask 203776   ;;  %s1754_s13 = smov (!%p168_p4, %s1374_s13), 1  ;;  %vm974_vm2 = vcmask 80896  }
   0xd   : > { %1208 = vmatpush3.msk.msra.mxu0 %vm473_vm0, %v248_v0  ;;  %1327 = vmatpush3.msk.msra.mxu1 %vm473_vm0, %v248_v0  ;;  %s1394_s26 = scalar_lea.vmem %s1747_s0, %s1053_s23  ;;  %s1331_s29 = smul.u32 144, %s1754_s13 }
   0xe   : > { %1209 = vmatprep.subr.mxu0 %v247_v1  ;;  %1324 = vmatprep.subr.mxu1 %v247_v1  ;;  %v173_v4 = vld [vmem:[%s1394_s26] sm:$0xff]  ;;  %v174_v6 = vld [vmem:[%s1394_s26 + $0x8] sm:$0xff]  ;;  %v175_v8 = vld [vmem:[%s1394_s26 + $0x10] sm:$0xff] }
   0xf   : > { %1210 = vmatpush3.msra.mxu0 %v247_v1  ;;  %1328 = vmatpush3.msra.mxu1 %v247_v1  ;;  %v209_v5 = vld [vmem:[%s1394_s26 + $0x120] sm:$0xff]  ;;  %v210_v7 = vld [vmem:[%s1394_s26 + $0x128] sm:$0xff]  ;;  %v211_v9 = vld [vmem:[%s1394_s26 + $0x130] sm:$0xff]  ;;  %s1619_s5 = scalar_lea.vmem %s1750_s3, %s1331_s29 }
  0x10   : > { %1211 = vmatprep.subr.mxu0 %v246_v2  ;;  %1325 = vmatprep.subr.mxu1 %v246_v2  ;;  %v176_v10 = vld [vmem:[%s1394_s26 + $0x18] sm:$0xff]  ;;  %v177_v12 = vld [vmem:[%s1394_s26 + $0x20] sm:$0xff]  ;;  %v178_v14 = vld [vmem:[%s1394_s26 + $0x28] sm:$0xff] }
  0x11   : > { %1212 = vmatpush3.msra.mxu0 %v246_v2  ;;  %1329 = vmatpush3.msra.mxu1 %v246_v2  ;;  %v212_v11 = vld [vmem:[%s1394_s26 + $0x138] sm:$0xff]  ;;  %v213_v13 = vld [vmem:[%s1394_s26 + $0x140] sm:$0xff]  ;;  %v214_v15 = vld [vmem:[%s1394_s26 + $0x148] sm:$0xff] }
  0x12   : > { %1213 = vmatprep.subr.mxu0 %v245_v3  ;;  %1326 = vmatprep.subr.mxu1 %v245_v3  ;;  %v179_v16 = vld [vmem:[%s1394_s26 + $0x30] sm:$0xff]  ;;  %v180_v18 = vld [vmem:[%s1394_s26 + $0x38] sm:$0xff]  ;;  %v181_v20 = vld [vmem:[%s1394_s26 + $0x40] sm:$0xff] }
  0x13   : > { %1214 = vmatpush3.msra.mxu0 %v245_v3  ;;  %1330 = vmatpush3.msra.mxu1 %v245_v3  ;;  %v215_v17 = vld [vmem:[%s1394_s26 + $0x150] sm:$0xff]  ;;  %v216_v19 = vld [vmem:[%s1394_s26 + $0x158] sm:$0xff]  ;;  %v217_v21 = vld [vmem:[%s1394_s26 + $0x160] sm:$0xff] }
  0x14   : > { %1215 = vmatprep.mubr.msk.f32.mxu0 %vm256_vm1, %v173_v4  ;;  %1269 = vmatprep.mubr.msk.f32.mxu1 %vm256_vm1, %v209_v5  ;;  %v182_v22 = vld [vmem:[%s1394_s26 + $0x48] sm:$0xff]  ;;  %v183_v24 = vld [vmem:[%s1394_s26 + $0x50] sm:$0xff]  ;;  %v184_v26 = vld [vmem:[%s1394_s26 + $0x58] sm:$0xff] }
  0x15   : > { %1216 = vmatmul.mubr.msk.f32.vlgmr.msra.gmra.mxu0 %vm256_vm1, %v174_v6  ;;  %1270 = vmatmul.mubr.msk.f32.vlgmr.msra.gmra.mxu1 %vm256_vm1, %v210_v7  ;;  %v218_v23 = vld [vmem:[%s1394_s26 + $0x168] sm:$0xff]  ;;  %v219_v25 = vld [vmem:[%s1394_s26 + $0x170] sm:$0xff]  ;;  %v220_v27 = vld [vmem:[%s1394_s26 + $0x178] sm:$0xff] }
  0x16   : > { %1218 = vmatprep.mubr.msk.f32.mxu0 %vm256_vm1, %v175_v8  ;;  %1272 = vmatprep.mubr.msk.f32.mxu1 %vm256_vm1, %v211_v9  ;;  %v185_v28 = vld [vmem:[%s1394_s26 + $0x60] sm:$0xff]  ;;  %v186_v30 = vld [vmem:[%s1394_s26 + $0x68] sm:$0xff]  ;;  %v187_v32 = vld [vmem:[%s1394_s26 + $0x70] sm:$0xff] }
  0x17   : > { %v221_v29 = vld [vmem:[%s1394_s26 + $0x180] sm:$0xff]  ;;  %v222_v31 = vld [vmem:[%s1394_s26 + $0x188] sm:$0xff]  ;;  %v223_v33 = vld [vmem:[%s1394_s26 + $0x190] sm:$0xff] }
  0x18   : > { %v188_v34 = vld [vmem:[%s1394_s26 + $0x78] sm:$0xff]  ;;  %v189_v36 = vld [vmem:[%s1394_s26 + $0x80] sm:$0xff]  ;;  %v190_v38 = vld [vmem:[%s1394_s26 + $0x88] sm:$0xff] }
  0x19   : > { %1219 = vmatmul.mubr.msk.f32.gmra.mxu0 %vm256_vm1, %v176_v10  ;;  %1273 = vmatmul.mubr.msk.f32.gmra.mxu1 %vm256_vm1, %v212_v11  ;;  %v224_v35 = vld [vmem:[%s1394_s26 + $0x198] sm:$0xff]  ;;  %v225_v37 = vld [vmem:[%s1394_s26 + $0x1a0] sm:$0xff]  ;;  %v226_v39 = vld [vmem:[%s1394_s26 + $0x1a8] sm:$0xff] }
  0x1a   : > { %1221 = vmatprep.mubr.msk.f32.mxu0 %vm256_vm1, %v177_v12  ;;  %1275 = vmatprep.mubr.msk.f32.mxu1 %vm256_vm1, %v213_v13  ;;  %v191_v40 = vld [vmem:[%s1394_s26 + $0x90] sm:$0xff]  ;;  %v192_v42 = vld [vmem:[%s1394_s26 + $0x98] sm:$0xff]  ;;  %v193_v44 = vld [vmem:[%s1394_s26 + $0xa0] sm:$0xff] }
  0x1b   : > { %v227_v41 = vld [vmem:[%s1394_s26 + $0x1b0] sm:$0xff]  ;;  %v228_v43 = vld [vmem:[%s1394_s26 + $0x1b8] sm:$0xff]  ;;  %v229_v45 = vld [vmem:[%s1394_s26 + $0x1c0] sm:$0xff] }
  0x1c   : > { %v194_v46 = vld [vmem:[%s1394_s26 + $0xa8] sm:$0xff]  ;;  %v195_v48 = vld [vmem:[%s1394_s26 + $0xb0] sm:$0xff]  ;;  %v196_v50 = vld [vmem:[%s1394_s26 + $0xb8] sm:$0xff] }
  0x1d   : > { %1222 = vmatmul.mubr.msk.f32.gmra.mxu0 %vm256_vm1, %v178_v14  ;;  %1276 = vmatmul.mubr.msk.f32.gmra.mxu1 %vm256_vm1, %v214_v15  ;;  %v230_v47 = vld [vmem:[%s1394_s26 + $0x1c8] sm:$0xff]  ;;  %v231_v49 = vld [vmem:[%s1394_s26 + $0x1d0] sm:$0xff]  ;;  %v232_v51 = vld [vmem:[%s1394_s26 + $0x1d8] sm:$0xff] }
  0x1e   : > { %1224 = vmatprep.mubr.msk.f32.mxu0 %vm256_vm1, %v179_v16  ;;  %1278 = vmatprep.mubr.msk.f32.mxu1 %vm256_vm1, %v215_v17  ;;  %v197_v52 = vld [vmem:[%s1394_s26 + $0xc0] sm:$0xff]  ;;  %v198_v54 = vld [vmem:[%s1394_s26 + $0xc8] sm:$0xff]  ;;  %v199_v56 = vld [vmem:[%s1394_s26 + $0xd0] sm:$0xff] }
  0x1f   : > { %v233_v53 = vld [vmem:[%s1394_s26 + $0x1e0] sm:$0xff]  ;;  %v234_v55 = vld [vmem:[%s1394_s26 + $0x1e8] sm:$0xff]  ;;  %v235_v57 = vld [vmem:[%s1394_s26 + $0x1f0] sm:$0xff] }
  0x20   : > { %v200_v58 = vld [vmem:[%s1394_s26 + $0xd8] sm:$0xff]  ;;  %v201_v60 = vld [vmem:[%s1394_s26 + $0xe0] sm:$0xff]  ;;  %v202_v62 = vld [vmem:[%s1394_s26 + $0xe8] sm:$0xff] }
  0x21   : > { %1225 = vmatmul.mubr.msk.f32.gmra.mxu0 %vm256_vm1, %v180_v18  ;;  %1279 = vmatmul.mubr.msk.f32.gmra.mxu1 %vm256_vm1, %v216_v19  ;;  %v236_v59 = vld [vmem:[%s1394_s26 + $0x1f8] sm:$0xff]  ;;  %v237_v61 = vld [vmem:[%s1394_s26 + $0x200] sm:$0xff]  ;;  %v238_v63 = vld [vmem:[%s1394_s26 + $0x208] sm:$0xff] }
  0x22   : > { %1227 = vmatprep.mubr.msk.f32.mxu0 %vm256_vm1, %v181_v20  ;;  %1281 = vmatprep.mubr.msk.f32.mxu1 %vm256_vm1, %v217_v21  ;;  %v203_v0 = vld [vmem:[%s1394_s26 + $0xf0] sm:$0xff]  ;;  %v204_v2 = vld [vmem:[%s1394_s26 + $0xf8] sm:$0xff]  ;;  %v205_v4 = vld [vmem:[%s1394_s26 + $0x100] sm:$0xff] }
  0x23   : > { %v239_v1 = vld [vmem:[%s1394_s26 + $0x210] sm:$0xff]  ;;  %v240_v3 = vld [vmem:[%s1394_s26 + $0x218] sm:$0xff]  ;;  %v241_v5 = vld [vmem:[%s1394_s26 + $0x220] sm:$0xff] }
  0x24   : > { %v206_v6 = vld [vmem:[%s1394_s26 + $0x108] sm:$0xff]  ;;  %v207_v8 = vld [vmem:[%s1394_s26 + $0x110] sm:$0xff]  ;;  %v208_v10 = vld [vmem:[%s1394_s26 + $0x118] sm:$0xff] }
  0x25   : > { %1228 = vmatmul.mubr.msk.f32.gmra.mxu0 %vm256_vm1, %v182_v22  ;;  %1282 = vmatmul.mubr.msk.f32.gmra.mxu1 %vm256_vm1, %v218_v23  ;;  %v242_v7 = vld [vmem:[%s1394_s26 + $0x228] sm:$0xff]  ;;  %v243_v9 = vld [vmem:[%s1394_s26 + $0x230] sm:$0xff]  ;;  %v244_v11 = vld [vmem:[%s1394_s26 + $0x238] sm:$0xff] }
  0x26   : > { %1230 = vmatprep.mubr.msk.f32.mxu0 %vm256_vm1, %v183_v24  ;;  %1284 = vmatprep.mubr.msk.f32.mxu1 %vm256_vm1, %v219_v25 }
  0x29   : > { %1231 = vmatmul.mubr.msk.f32.gmra.mxu0 %vm256_vm1, %v184_v26  ;;  %1285 = vmatmul.mubr.msk.f32.gmra.mxu1 %vm256_vm1, %v220_v27 }
  0x2a   : > { %1233 = vmatprep.mubr.msk.f32.mxu0 %vm256_vm1, %v185_v28  ;;  %1287 = vmatprep.mubr.msk.f32.mxu1 %vm256_vm1, %v221_v29 }
  0x2d   : > { %1234 = vmatmul.mubr.msk.f32.gmra.mxu0 %vm256_vm1, %v186_v30  ;;  %1288 = vmatmul.mubr.msk.f32.gmra.mxu1 %vm256_vm1, %v222_v31 }
  0x2e   : > { %1236 = vmatprep.mubr.msk.f32.mxu0 %vm256_vm1, %v187_v32  ;;  %1290 = vmatprep.mubr.msk.f32.mxu1 %vm256_vm1, %v223_v33 }
  0x31   : > { %1237 = vmatmul.mubr.msk.f32.gmra.mxu0 %vm256_vm1, %v188_v34  ;;  %1291 = vmatmul.mubr.msk.f32.gmra.mxu1 %vm256_vm1, %v224_v35 }
  0x32   : > { %1239 = vmatprep.mubr.msk.f32.mxu0 %vm256_vm1, %v189_v36  ;;  %1293 = vmatprep.mubr.msk.f32.mxu1 %vm256_vm1, %v225_v37 }
  0x35   : > { %1240 = vmatmul.mubr.msk.f32.gmra.mxu0 %vm256_vm1, %v190_v38  ;;  %1294 = vmatmul.mubr.msk.f32.gmra.mxu1 %vm256_vm1, %v226_v39 }
  0x36   : > { %1242 = vmatprep.mubr.msk.f32.mxu0 %vm256_vm1, %v191_v40  ;;  %1296 = vmatprep.mubr.msk.f32.mxu1 %vm256_vm1, %v227_v41 }
  0x39   : > { %1243 = vmatmul.mubr.msk.f32.gmra.mxu0 %vm256_vm1, %v192_v42  ;;  %1297 = vmatmul.mubr.msk.f32.gmra.mxu1 %vm256_vm1, %v228_v43 }
  0x3a   : > { %1245 = vmatprep.mubr.msk.f32.mxu0 %vm256_vm1, %v193_v44  ;;  %1299 = vmatprep.mubr.msk.f32.mxu1 %vm256_vm1, %v229_v45 }
  0x3d   : > { %1246 = vmatmul.mubr.msk.f32.gmra.mxu0 %vm256_vm1, %v194_v46  ;;  %1300 = vmatmul.mubr.msk.f32.gmra.mxu1 %vm256_vm1, %v230_v47  ;;  %v1596_v46 = vld [vmem:[%s1749_s2] ss:$0 sm:$0xff] }
  0x3e   : > { %1248 = vmatprep.mubr.msk.f32.mxu0 %vm256_vm1, %v195_v48  ;;  %1302 = vmatprep.mubr.msk.f32.mxu1 %vm256_vm1, %v231_v49 }
  0x41   : > { %1249 = vmatmul.mubr.msk.f32.gmra.mxu0 %vm256_vm1, %v196_v50  ;;  %1303 = vmatmul.mubr.msk.f32.gmra.mxu1 %vm256_vm1, %v232_v51 }
  0x42   : > { %1251 = vmatprep.mubr.msk.f32.mxu0 %vm256_vm1, %v197_v52  ;;  %1305 = vmatprep.mubr.msk.f32.mxu1 %vm256_vm1, %v233_v53 }
  0x45   : > { %1252 = vmatmul.mubr.msk.f32.gmra.mxu0 %vm256_vm1, %v198_v54  ;;  %1306 = vmatmul.mubr.msk.f32.gmra.mxu1 %vm256_vm1, %v234_v55 }
  0x46   : > { %1254 = vmatprep.mubr.msk.f32.mxu0 %vm256_vm1, %v199_v56  ;;  %1308 = vmatprep.mubr.msk.f32.mxu1 %vm256_vm1, %v235_v57 }
  0x49   : > { %1255 = vmatmul.mubr.msk.f32.gmra.mxu0 %vm256_vm1, %v200_v58  ;;  %1309 = vmatmul.mubr.msk.f32.gmra.mxu1 %vm256_vm1, %v236_v59 }
  0x4a   : > { %1257 = vmatprep.mubr.msk.f32.mxu0 %vm256_vm1, %v201_v60  ;;  %1311 = vmatprep.mubr.msk.f32.mxu1 %vm256_vm1, %v237_v61 }
  0x4d   : > { %1258 = vmatmul.mubr.msk.f32.gmra.mxu0 %vm256_vm1, %v202_v62  ;;  %1312 = vmatmul.mubr.msk.f32.gmra.mxu1 %vm256_vm1, %v238_v63 }
  0x4e   : > { %1260 = vmatprep.mubr.msk.f32.mxu0 %vm256_vm1, %v203_v0  ;;  %1314 = vmatprep.mubr.msk.f32.mxu1 %vm256_vm1, %v239_v1 }
  0x51   : > { %1261 = vmatmul.mubr.msk.f32.gmra.mxu0 %vm256_vm1, %v204_v2  ;;  %1315 = vmatmul.mubr.msk.f32.gmra.mxu1 %vm256_vm1, %v240_v3 }
  0x52   : > { %1263 = vmatprep.mubr.msk.f32.mxu0 %vm256_vm1, %v205_v4  ;;  %1317 = vmatprep.mubr.msk.f32.mxu1 %vm256_vm1, %v241_v5 }
  0x55   : > { %1264 = vmatmul.mubr.msk.f32.gmra.mxu0 %vm256_vm1, %v206_v6  ;;  %1318 = vmatmul.mubr.msk.f32.gmra.mxu1 %vm256_vm1, %v242_v7 }
  0x56   : > { %1266 = vmatprep.mubr.msk.f32.mxu0 %vm256_vm1, %v207_v8  ;;  %1320 = vmatprep.mubr.msk.f32.mxu1 %vm256_vm1, %v243_v9 }
  0x59   : > { %1267 = vmatmul.mubr.msk.f32.gmra.mxu0 %vm256_vm1, %v208_v10  ;;  %1321 = vmatmul.mubr.msk.f32.gmra.mxu1 %vm256_vm1, %v244_v11 }
  0xd5   : > { %v1217_v12 = vpop.f32.mrf.mxu0  ;;  %v1271_v13 = vpop.f32.mrf.mxu1 }
  0xd6   : > { %v549_v51 = vadd.f32 %v1217_v12, %v1596_v46  ;;  %v729_v52 = vadd.f32 %v1271_v13, %v1596_v46 }
  0xd7   : > { %v543_v14 = vpop.f32.mrf.mxu0  ;;  %v723_v15 = vpop.f32.mrf.mxu1 }
  0xd8   : > { %v544_v55 = vadd.f32 %v1596_v46, %v543_v14  ;;  %v724_v56 = vadd.f32 %v1596_v46, %v723_v15 }
  0xd9   : > { %v1220_v16 = vpop.f32.mrf.mxu0  ;;  %v1274_v17 = vpop.f32.mrf.mxu1 }
  0xda   : > { %v559_v63 = vadd.f32 %v1220_v16, %v1596_v46  ;;  %v739_v6 = vadd.f32 %v1274_v17, %v1596_v46 }
  0xdb   : > { %v553_v18 = vpop.f32.mrf.mxu0  ;;  %v733_v19 = vpop.f32.mrf.mxu1 }
  0xdc   : > { %v554_v7 = vadd.f32 %v1596_v46, %v553_v18  ;;  %v734_v8 = vadd.f32 %v1596_v46, %v733_v19 }
  0xdd   : > { %v1540_v20 = vpop.f32.mrf.mxu0  ;;  %v1542_v21 = vpop.f32.mrf.mxu1 }
  0xde   : > { %v569_v16 = vadd.f32 %v1540_v20, %v1596_v46  ;;  %v749_v17 = vadd.f32 %v1542_v21, %v1596_v46 }
  0xdf   : > { %v1544_v22 = vpop.f32.mrf.mxu0  ;;  %v1546_v23 = vpop.f32.mrf.mxu1 }
  0xe0   : > { %v564_v20 = vadd.f32 %v1596_v46, %v1544_v22  ;;  %v744_v21 = vadd.f32 %v1596_v46, %v1546_v23 }
  0xe1   : > { %v1548_v24 = vpop.f32.mrf.mxu0  ;;  %v1550_v25 = vpop.f32.mrf.mxu1 }
  0xe2   : > { %v759_v22 = vadd.f32 %v1550_v25, %v1596_v46 }
  0xe3   : > { %v1552_v26 = vpop.f32.mrf.mxu0  ;;  %v1554_v27 = vpop.f32.mrf.mxu1 }
  0xe5   : > { %v1556_v28 = vpop.f32.mrf.mxu0  ;;  %v1558_v29 = vpop.f32.mrf.mxu1 }
  0xe7   : > { %v1560_v30 = vpop.f32.mrf.mxu0  ;;  %v1562_v31 = vpop.f32.mrf.mxu1 }
  0xe9   : > { %v1564_v32 = vpop.f32.mrf.mxu0  ;;  %v1566_v33 = vpop.f32.mrf.mxu1 }
  0xeb   : > { %v1568_v34 = vpop.f32.mrf.mxu0  ;;  %v1570_v35 = vpop.f32.mrf.mxu1 }
  0xed   : > { %v1572_v36 = vpop.f32.mrf.mxu0  ;;  %v1574_v37 = vpop.f32.mrf.mxu1 }
  0xef   : > { %v1576_v38 = vpop.f32.mrf.mxu0  ;;  %v1578_v39 = vpop.f32.mrf.mxu1 }
  0xf1   : > { %v1580_v40 = vpop.f32.mrf.mxu0  ;;  %v1582_v41 = vpop.f32.mrf.mxu1 }
  0xf3   : > { %v1584_v42 = vpop.f32.mrf.mxu0  ;;  %v1586_v43 = vpop.f32.mrf.mxu1 }
  0xf5   : > { %v1589_v44 = vpop.f32.mrf.mxu0  ;;  %v1591_v45 = vpop.f32.mrf.mxu1 }
  0xf7   : > { %v1598_v47 = vpop.f32.mrf.mxu0  ;;  %v1600_v48 = vpop.f32.mrf.mxu1 }
  0xf9   : > { %v1244_v49 = vpop.f32.mrf.mxu0  ;;  %v1298_v50 = vpop.f32.mrf.mxu1 }
  0xfa   : > { %v639_v53 = vadd.f32 %v1244_v49, %v1596_v46  ;;  %v819_v54 = vadd.f32 %v1298_v50, %v1596_v46 }
  0xfb   : > { %v633_v57 = vpop.f32.mrf.mxu0  ;;  %v813_v58 = vpop.f32.mrf.mxu1 }
  0xfc   : > { %v903_v59 = vmax.f32 %v549_v51, %v639_v53  ;;  %v921_v60 = vmax.f32 %v729_v52, %v819_v54  ;;  %v634_v61 = vadd.f32 %v1596_v46, %v633_v57  ;;  %v814_v62 = vadd.f32 %v1596_v46, %v813_v58 }
  0xfd   : > { %v1247_v0 = vpop.f32.mrf.mxu0  ;;  %v1301_v1 = vpop.f32.mrf.mxu1 }
  0xfe   : > { %v939_v2 = vmax.f32 %v903_v59, %v921_v60  ;;  %v902_v3 = vmax.f32 %v544_v55, %v634_v61  ;;  %v920_v4 = vmax.f32 %v724_v56, %v814_v62  ;;  %v649_v5 = vadd.f32 %v1247_v0, %v1596_v46 }
  0xff   : > { %v829_v9 = vadd.f32 %v1301_v1, %v1596_v46  ;;  %v643_v10 = vpop.f32.mrf.mxu0  ;;  %v823_v11 = vpop.f32.mrf.mxu1 }
 0x100   : > { %v957_v12 = vmax.f32 %v939_v2, 0.0  ;;  %v938_v13 = vmax.f32 %v902_v3, %v920_v4  ;;  %v905_v14 = vmax.f32 %v559_v63, %v649_v5  ;;  %v644_v15 = vadd.f32 %v1596_v46, %v643_v10 }
 0x101   : > { %v923_v18 = vmax.f32 %v739_v6, %v829_v9  ;;  %v824_v19 = vadd.f32 %v1596_v46, %v823_v11  ;;  %v1250_v49 = vpop.f32.mrf.mxu0  ;;  %v1304_v50 = vpop.f32.mrf.mxu1  ;;  %v579_v63 = vadd.f32 %v1548_v24, %v1596_v46 }
 0x102   : > { %976 = vst.msk [vmem:[%s1619_s5 + $0x8] sm:$0xff] %vm974_vm2, %v957_v12  ;;  %v956_v51 = vmax.f32 %v938_v13, 0.0  ;;  %v904_v52 = vmax.f32 %v554_v7, %v644_v15  ;;  %v659_v53 = vadd.f32 %v1250_v49, %v1596_v46  ;;  %v839_v54 = vadd.f32 %v1304_v50, %v1596_v46 }
 0x103   : > { %v941_v55 = vmax.f32 %v905_v14, %v923_v18  ;;  %v922_v56 = vmax.f32 %v734_v8, %v824_v19  ;;  %v653_v57 = vpop.f32.mrf.mxu0  ;;  %v833_v58 = vpop.f32.mrf.mxu1  ;;  %v574_v7 = vadd.f32 %v1596_v46, %v1552_v26  ;;  %v754_v8 = vadd.f32 %v1596_v46, %v1554_v27 }
 0x104   : > { %975 = vst.msk [vmem:[%s1619_s5] sm:$0xff] %vm974_vm2, %v956_v51  ;;  %v907_v59 = vmax.f32 %v569_v16, %v659_v53  ;;  %v925_v60 = vmax.f32 %v749_v17, %v839_v54  ;;  %v654_v61 = vadd.f32 %v1596_v46, %v653_v57  ;;  %v834_v62 = vadd.f32 %v1596_v46, %v833_v58 }
 0x105   : > { %v959_v23 = vmax.f32 %v941_v55, 0.0  ;;  %v940_v0 = vmax.f32 %v904_v52, %v922_v56  ;;  %v1253_v1 = vpop.f32.mrf.mxu0  ;;  %v1307_v2 = vpop.f32.mrf.mxu1  ;;  %v589_v15 = vadd.f32 %v1556_v28, %v1596_v46  ;;  %v769_v26 = vadd.f32 %v1558_v29, %v1596_v46 }
 0x106   : > { %v943_v3 = vmax.f32 %v907_v59, %v925_v60  ;;  %v906_v4 = vmax.f32 %v564_v20, %v654_v61  ;;  %v924_v5 = vmax.f32 %v744_v21, %v834_v62  ;;  %v669_v6 = vadd.f32 %v1253_v1, %v1596_v46 }
 0x107   : > { %978 = vst.msk [vmem:[%s1619_s5 + $0x18] sm:$0xff] %vm974_vm2, %v959_v23  ;;  %v958_v24 = vmax.f32 %v940_v0, 0.0  ;;  %v849_v25 = vadd.f32 %v1307_v2, %v1596_v46  ;;  %v663_v9 = vpop.f32.mrf.mxu0  ;;  %v843_v10 = vpop.f32.mrf.mxu1  ;;  %v584_v28 = vadd.f32 %v1596_v46, %v1560_v30  ;;  %v764_v29 = vadd.f32 %v1596_v46, %v1562_v31 }
 0x108   : > { %v961_v11 = vmax.f32 %v943_v3, 0.0  ;;  %v942_v12 = vmax.f32 %v906_v4, %v924_v5  ;;  %v909_v13 = vmax.f32 %v579_v63, %v669_v6  ;;  %v664_v14 = vadd.f32 %v1596_v46, %v663_v9 }
 0x109   : > { %977 = vst.msk [vmem:[%s1619_s5 + $0x10] sm:$0xff] %vm974_vm2, %v958_v24  ;;  %v927_v27 = vmax.f32 %v759_v22, %v849_v25  ;;  %v844_v16 = vadd.f32 %v1596_v46, %v843_v10  ;;  %v1256_v17 = vpop.f32.mrf.mxu0  ;;  %v1310_v18 = vpop.f32.mrf.mxu1  ;;  %v599_v58 = vadd.f32 %v1564_v32, %v1596_v46  ;;  %v779_v30 = vadd.f32 %v1566_v33, %v1596_v46 }
 0x10a   : > { %980 = vst.msk [vmem:[%s1619_s5 + $0x28] sm:$0xff] %vm974_vm2, %v961_v11  ;;  %v960_v19 = vmax.f32 %v942_v12, 0.0  ;;  %v908_v49 = vmax.f32 %v574_v7, %v664_v14  ;;  %v679_v50 = vadd.f32 %v1256_v17, %v1596_v46  ;;  %v859_v51 = vadd.f32 %v1310_v18, %v1596_v46 }
 0x10b   : > { %v945_v52 = vmax.f32 %v909_v13, %v927_v27  ;;  %v926_v53 = vmax.f32 %v754_v8, %v844_v16  ;;  %v673_v54 = vpop.f32.mrf.mxu0  ;;  %v853_v20 = vpop.f32.mrf.mxu1  ;;  %v594_v0 = vadd.f32 %v1596_v46, %v1568_v34  ;;  %v774_v1 = vadd.f32 %v1596_v46, %v1570_v35 }
 0x10c   : > { %979 = vst.msk [vmem:[%s1619_s5 + $0x20] sm:$0xff] %vm974_vm2, %v960_v19  ;;  %v911_v21 = vmax.f32 %v589_v15, %v679_v50  ;;  %v929_v55 = vmax.f32 %v769_v26, %v859_v51  ;;  %v674_v56 = vadd.f32 %v1596_v46, %v673_v54  ;;  %v854_v57 = vadd.f32 %v1596_v46, %v853_v20 }
 0x10d   : > { %v963_v31 = vmax.f32 %v945_v52, 0.0  ;;  %v944_v59 = vmax.f32 %v908_v49, %v926_v53  ;;  %v1259_v60 = vpop.f32.mrf.mxu0  ;;  %v1313_v61 = vpop.f32.mrf.mxu1  ;;  %v609_v8 = vadd.f32 %v1572_v36, %v1596_v46  ;;  %v789_v34 = vadd.f32 %v1574_v37, %v1596_v46 }
 0x10e   : > { %v947_v62 = vmax.f32 %v911_v21, %v929_v55  ;;  %v910_v63 = vmax.f32 %v584_v28, %v674_v56  ;;  %v928_v22 = vmax.f32 %v764_v29, %v854_v57  ;;  %v689_v23 = vadd.f32 %v1259_v60, %v1596_v46 }
 0x10f   : > { %982 = vst.msk [vmem:[%s1619_s5 + $0x38] sm:$0xff] %vm974_vm2, %v963_v31  ;;  %v962_v32 = vmax.f32 %v944_v59, 0.0  ;;  %v869_v33 = vadd.f32 %v1313_v61, %v1596_v46  ;;  %v683_v2 = vpop.f32.mrf.mxu0  ;;  %v863_v3 = vpop.f32.mrf.mxu1  ;;  %v604_v36 = vadd.f32 %v1596_v46, %v1576_v38  ;;  %v784_v37 = vadd.f32 %v1596_v46, %v1578_v39 }
 0x110   : > { %v965_v4 = vmax.f32 %v947_v62, 0.0  ;;  %v946_v5 = vmax.f32 %v910_v63, %v928_v22  ;;  %v913_v6 = vmax.f32 %v599_v58, %v689_v23  ;;  %v684_v7 = vadd.f32 %v1596_v46, %v683_v2 }
 0x111   : > { %981 = vst.msk [vmem:[%s1619_s5 + $0x30] sm:$0xff] %vm974_vm2, %v962_v32  ;;  %v931_v35 = vmax.f32 %v779_v30, %v869_v33  ;;  %v864_v24 = vadd.f32 %v1596_v46, %v863_v3  ;;  %v1262_v25 = vpop.f32.mrf.mxu0  ;;  %v1316_v9 = vpop.f32.mrf.mxu1  ;;  %v619_v49 = vadd.f32 %v1580_v40, %v1596_v46  ;;  %v799_v38 = vadd.f32 %v1582_v41, %v1596_v46 }
 0x112   : > { %984 = vst.msk [vmem:[%s1619_s5 + $0x48] sm:$0xff] %vm974_vm2, %v965_v4  ;;  %v964_v10 = vmax.f32 %v946_v5, 0.0  ;;  %v912_v11 = vmax.f32 %v594_v0, %v684_v7  ;;  %v699_v12 = vadd.f32 %v1262_v25, %v1596_v46  ;;  %v879_v13 = vadd.f32 %v1316_v9, %v1596_v46 }
 0x113   : > { %v949_v14 = vmax.f32 %v913_v6, %v931_v35  ;;  %v930_v15 = vmax.f32 %v774_v1, %v864_v24  ;;  %v693_v26 = vpop.f32.mrf.mxu0  ;;  %v873_v27 = vpop.f32.mrf.mxu1  ;;  %v614_v20 = vadd.f32 %v1596_v46, %v1584_v42  ;;  %v794_v21 = vadd.f32 %v1596_v46, %v1586_v43 }
 0x114   : > { %983 = vst.msk [vmem:[%s1619_s5 + $0x40] sm:$0xff] %vm974_vm2, %v964_v10  ;;  %v915_v16 = vmax.f32 %v609_v8, %v699_v12  ;;  %v933_v17 = vmax.f32 %v789_v34, %v879_v13  ;;  %v694_v18 = vadd.f32 %v1596_v46, %v693_v26  ;;  %v874_v19 = vadd.f32 %v1596_v46, %v873_v27 }
 0x115   : > { %v967_v39 = vmax.f32 %v949_v14, 0.0  ;;  %v948_v50 = vmax.f32 %v912_v11, %v930_v15  ;;  %v1265_v51 = vpop.f32.mrf.mxu0  ;;  %v1319_v28 = vpop.f32.mrf.mxu1  ;;  %v629_v59 = vadd.f32 %v1589_v44, %v1596_v46  ;;  %v809_v42 = vadd.f32 %v1591_v45, %v1596_v46 }
 0x116   : > { %v951_v29 = vmax.f32 %v915_v16, %v933_v17  ;;  %v914_v52 = vmax.f32 %v604_v36, %v694_v18  ;;  %v932_v53 = vmax.f32 %v784_v37, %v874_v19  ;;  %v709_v54 = vadd.f32 %v1265_v51, %v1596_v46 }
 0x117   : > { %986 = vst.msk [vmem:[%s1619_s5 + $0x58] sm:$0xff] %vm974_vm2, %v967_v39  ;;  %v966_v40 = vmax.f32 %v948_v50, 0.0  ;;  %v889_v41 = vadd.f32 %v1319_v28, %v1596_v46  ;;  %v703_v55 = vpop.f32.mrf.mxu0  ;;  %v883_v56 = vpop.f32.mrf.mxu1  ;;  %v624_v44 = vadd.f32 %v1596_v46, %v1598_v47  ;;  %v804_v45 = vadd.f32 %v1596_v46, %v1600_v48 }
 0x118   : > { %v969_v57 = vmax.f32 %v951_v29, 0.0  ;;  %v950_v58 = vmax.f32 %v914_v52, %v932_v53  ;;  %v917_v30 = vmax.f32 %v619_v49, %v709_v54  ;;  %v704_v31 = vadd.f32 %v1596_v46, %v703_v55 }
 0x119   : > { %985 = vst.msk [vmem:[%s1619_s5 + $0x50] sm:$0xff] %vm974_vm2, %v966_v40  ;;  %v935_v43 = vmax.f32 %v799_v38, %v889_v41  ;;  %v884_v60 = vadd.f32 %v1596_v46, %v883_v56  ;;  %v1268_v61 = vpop.f32.mrf.mxu0  ;;  %v1322_v62 = vpop.f32.mrf.mxu1 }
 0x11a   : > { %988 = vst.msk [vmem:[%s1619_s5 + $0x68] sm:$0xff] %vm974_vm2, %v969_v57  ;;  %v968_v63 = vmax.f32 %v950_v58, 0.0  ;;  %v916_v22 = vmax.f32 %v614_v20, %v704_v31  ;;  %v719_v23 = vadd.f32 %v1268_v61, %v1596_v46  ;;  %v899_v0 = vadd.f32 %v1322_v62, %v1596_v46 }
 0x11b   : > { %v953_v1 = vmax.f32 %v917_v30, %v935_v43  ;;  %v934_v32 = vmax.f32 %v794_v21, %v884_v60  ;;  %v713_v33 = vpop.f32.mrf.mxu0  ;;  %v893_v2 = vpop.f32.mrf.mxu1 }
 0x11c   : > { %987 = vst.msk [vmem:[%s1619_s5 + $0x60] sm:$0xff] %vm974_vm2, %v968_v63  ;;  %v919_v3 = vmax.f32 %v629_v59, %v719_v23  ;;  %v937_v4 = vmax.f32 %v809_v42, %v899_v0  ;;  %v714_v5 = vadd.f32 %v1596_v46, %v713_v33  ;;  %v894_v6 = vadd.f32 %v1596_v46, %v893_v2 }
 0x11d   : > { %v971_v47 = vmax.f32 %v953_v1, 0.0  ;;  %v952_v7 = vmax.f32 %v916_v22, %v934_v32 }
 0x11e   : > { %v955_v8 = vmax.f32 %v919_v3, %v937_v4  ;;  %v918_v34 = vmax.f32 %v624_v44, %v714_v5  ;;  %v936_v48 = vmax.f32 %v804_v45, %v894_v6 }
 0x11f   : > { %990 = vst.msk [vmem:[%s1619_s5 + $0x78] sm:$0xff] %vm974_vm2, %v971_v47  ;;  %v970_v35 = vmax.f32 %v952_v7, 0.0 }
 0x120   : > { %v973_v24 = vmax.f32 %v955_v8, 0.0  ;;  %v954_v25 = vmax.f32 %v918_v34, %v936_v48 }
 0x121   : > { %989 = vst.msk [vmem:[%s1619_s5 + $0x70] sm:$0xff] %vm974_vm2, %v970_v35 }
 0x122   : > { %992 = vst.msk [vmem:[%s1619_s5 + $0x88] sm:$0xff] %vm974_vm2, %v973_v24  ;;  %v972_v9 = vmax.f32 %v954_v25, 0.0 }
 0x124   : > { %991 = vst.msk [vmem:[%s1619_s5 + $0x80] sm:$0xff] %vm974_vm2, %v972_v9 }
 0x125 PF: > { %s13_s12 = sadd.s32 1, %s1346_s12  }
 0x126   : > { %p10_p5 = scmp.ge.s32.totalorder %s13_s12, 4  }
 0x128   :  { %12 = sbr.rel (!%p10_p5) target bundleno = 1 (0x1), region = 62 }

// kernel: net_forward.4
= control target key start
LH: loop header
LB: loop body
LE: loop exit
PB: predicated region body
PF: predicated region fallthrough
CT: control target
= control target key end

     0   :  { %s579_s12 = smov 0   ;;  %s726_s0 = inlined_call_operand.vmem [shape: f32[128,250], index: 0, kind: input, shape index: {}]   ;;  %s727_s1 = inlined_call_operand.vmem [shape: f32[250,20], index: 1, kind: input, shape index: {}]   ;;  %s728_s2 = inlined_call_operand.vmem [shape: f32[1,20], index: 2, kind: input, shape index: {}]   ;;  %s729_s3 = inlined_call_operand.vmem [shape: f32[2,16,20], index: 3, kind: output, shape index: {}]  }
   0x1 LB: > { %s585_s13 = sadd.s32 4294967295, %s557_s12   ;;  %p435_p0 = scmp.ge.s32.totalorder %s557_s12, 1  ;;  %s557_s12 = sphi %s579_s12, %s13_s12  }
   0x2   : > { %p139_p1 = scmp.lt.s32.totalorder %s557_s12, 3 }
   0x4   : > { %p140_p2 = pnand %p435_p0, %p139_p1 }
   0x5   : > { %s436_s21 = sshll.u32 (!%p140_p2), %s585_s13, 3  ;;  %p171_p4 = scmp.lt.s32.totalorder (!%p140_p2), %s585_s13, 1 }
   0x6   : > { %143 = sbr.rel (%p140_p2) target bundleno = 263 (0x107), region = 32  ;;  %p165_p3 = scmp.lt.s32.totalorder (!%p140_p2), %s436_s21, 15 }
   0xb   : > { %v223_v0 = vld [vmem:[%s727_s1 + $0xf8] sm:$0x3]  ;;  %vm256_vm0 = vcmask 1041408   ;;  %v222_v2 = vld [vmem:[%s727_s1 + $0xf0] sm:$0xff]  ;;  %v221_v4 = vld [vmem:[%s727_s1 + $0xe8] sm:$0xff]  ;;  %s731_s21 = smov (!%p165_p3, %s436_s21), 15 }
   0xc   : > { %v207_v1 = vld [vmem:[%s727_s1 + $0x78] sm:$0xff]  ;;  %455 = vmatprep.subr.msk.mxu0 %vm256_vm0, %v223_v0  ;;  %511 = vmatprep.subr.msk.mxu1 %vm256_vm0, %v223_v0  ;;  %v206_v3 = vld [vmem:[%s727_s1 + $0x70] sm:$0xff]  ;;  %v205_v5 = vld [vmem:[%s727_s1 + $0x68] sm:$0xff]  ;;  %s453_s19 = sshll.u32 %s731_s21, 4  ;;  %vm231_vm1 = vcmask 998400   ;;  %s733_s13 = smov (!%p171_p4, %s585_s13), 1 }
   0xd   : > { %456 = vmatpush3.msra.mxu0 %v207_v1  ;;  %527 = vmatpush3.msra.mxu1 %v207_v1  ;;  %v220_v6 = vld [vmem:[%s727_s1 + $0xe0] sm:$0xff]  ;;  %v219_v8 = vld [vmem:[%s727_s1 + $0xd8] sm:$0xff]  ;;  %v218_v10 = vld [vmem:[%s727_s1 + $0xd0] sm:$0xff]  ;;  %s683_s28 = scalar_lea.vmem %s726_s0, %s453_s19  ;;  %s454_s8 = sshll.u32 %s733_s13, 4  ;;  %vm373_vm2 = vcmask 162816  }
   0xe   : > { %457 = vmatprep.subr.mxu0 %v222_v2  ;;  %512 = vmatprep.subr.mxu1 %v222_v2  ;;  %v204_v7 = vld [vmem:[%s727_s1 + $0x60] sm:$0xff]  ;;  %v203_v9 = vld [vmem:[%s727_s1 + $0x58] sm:$0xff]  ;;  %v202_v11 = vld [vmem:[%s727_s1 + $0x50] sm:$0xff]  ;;  %s175_s11 = scalar_lea.vmem %s729_s3, %s454_s8 }
   0xf   : > { %458 = vmatpush3.msra.mxu0 %v206_v3  ;;  %528 = vmatpush3.msra.mxu1 %v206_v3  ;;  %v217_v12 = vld [vmem:[%s727_s1 + $0xc8] sm:$0xff]  ;;  %v216_v14 = vld [vmem:[%s727_s1 + $0xc0] sm:$0xff]  ;;  %v215_v16 = vld [vmem:[%s727_s1 + $0xb8] sm:$0xff] }
  0x10   : > { %459 = vmatprep.subr.mxu0 %v221_v4  ;;  %513 = vmatprep.subr.mxu1 %v221_v4  ;;  %v201_v13 = vld [vmem:[%s727_s1 + $0x48] sm:$0xff]  ;;  %v200_v15 = vld [vmem:[%s727_s1 + $0x40] sm:$0xff]  ;;  %v199_v17 = vld [vmem:[%s727_s1 + $0x38] sm:$0xff] }
  0x11   : > { %460 = vmatpush3.msra.mxu0 %v205_v5  ;;  %529 = vmatpush3.msra.mxu1 %v205_v5  ;;  %v214_v18 = vld [vmem:[%s727_s1 + $0xb0] sm:$0xff]  ;;  %v213_v20 = vld [vmem:[%s727_s1 + $0xa8] sm:$0xff]  ;;  %v212_v22 = vld [vmem:[%s727_s1 + $0xa0] sm:$0xff] }
  0x12   : > { %461 = vmatprep.subr.mxu0 %v220_v6  ;;  %514 = vmatprep.subr.mxu1 %v220_v6  ;;  %v198_v19 = vld [vmem:[%s727_s1 + $0x30] sm:$0xff]  ;;  %v197_v21 = vld [vmem:[%s727_s1 + $0x28] sm:$0xff]  ;;  %v196_v23 = vld [vmem:[%s727_s1 + $0x20] sm:$0xff] }
  0x13   : > { %462 = vmatpush3.msra.mxu0 %v204_v7  ;;  %530 = vmatpush3.msra.mxu1 %v204_v7  ;;  %v211_v24 = vld [vmem:[%s727_s1 + $0x98] sm:$0xff]  ;;  %v210_v26 = vld [vmem:[%s727_s1 + $0x90] sm:$0xff]  ;;  %v209_v28 = vld [vmem:[%s727_s1 + $0x88] sm:$0xff] }
  0x14   : > { %463 = vmatprep.subr.mxu0 %v219_v8  ;;  %515 = vmatprep.subr.mxu1 %v219_v8  ;;  %v195_v25 = vld [vmem:[%s727_s1 + $0x18] sm:$0xff]  ;;  %v194_v27 = vld [vmem:[%s727_s1 + $0x10] sm:$0xff]  ;;  %v193_v29 = vld [vmem:[%s727_s1 + $0x8] sm:$0xff] }
  0x15   : > { %464 = vmatpush3.msra.mxu0 %v203_v9  ;;  %531 = vmatpush3.msra.mxu1 %v203_v9  ;;  %v208_v30 = vld [vmem:[%s727_s1 + $0x80] sm:$0xff]  ;;  %v177_v32 = vld [vmem:[%s683_s28 + $0x8] sm:$0xff]  ;;  %v179_v36 = vld [vmem:[%s683_s28 + $0x18] sm:$0xff] }
  0x16   : > { %465 = vmatprep.subr.mxu0 %v218_v10  ;;  %516 = vmatprep.subr.mxu1 %v218_v10  ;;  %v192_v31 = vld [vmem:[%s727_s1] sm:$0xff]  ;;  %v185_v33 = vld [vmem:[%s683_s28 + $0x48] sm:$0xff]  ;;  %v187_v37 = vld [vmem:[%s683_s28 + $0x58] sm:$0xff] }
  0x17   : > { %466 = vmatpush3.msra.mxu0 %v202_v11  ;;  %532 = vmatpush3.msra.mxu1 %v202_v11  ;;  %v176_v34 = vld [vmem:[%s683_s28] sm:$0xff]  ;;  %v178_v38 = vld [vmem:[%s683_s28 + $0x10] sm:$0xff]  ;;  %v181_v40 = vld [vmem:[%s683_s28 + $0x28] sm:$0xff] }
  0x18   : > { %467 = vmatprep.subr.mxu0 %v217_v12  ;;  %517 = vmatprep.subr.mxu1 %v217_v12  ;;  %v184_v35 = vld [vmem:[%s683_s28 + $0x40] sm:$0xff]  ;;  %v186_v39 = vld [vmem:[%s683_s28 + $0x50] sm:$0xff]  ;;  %v189_v41 = vld [vmem:[%s683_s28 + $0x68] sm:$0xff] }
  0x19   : > { %468 = vmatpush3.msra.mxu0 %v201_v13  ;;  %533 = vmatpush3.msra.mxu1 %v201_v13  ;;  %v180_v42 = vld [vmem:[%s683_s28 + $0x20] sm:$0xff]  ;;  %v183_v44 = vld [vmem:[%s683_s28 + $0x38] sm:$0xff]  ;;  %v182_v46 = vld [vmem:[%s683_s28 + $0x30] sm:$0xff] }
  0x1a   : > { %469 = vmatprep.subr.mxu0 %v216_v14  ;;  %518 = vmatprep.subr.mxu1 %v216_v14  ;;  %v188_v43 = vld [vmem:[%s683_s28 + $0x60] sm:$0xff]  ;;  %v191_v45 = vld [vmem:[%s683_s28 + $0x78] sm:$0xff]  ;;  %v190_v47 = vld [vmem:[%s683_s28 + $0x70] sm:$0xff] }
  0x1b   : > { %470 = vmatpush3.msra.mxu0 %v200_v15  ;;  %534 = vmatpush3.msra.mxu1 %v200_v15  ;;  %v441_v59 = vld [vmem:[%s728_s2] ss:$0 sm:$0xff] }
  0x1c   : > { %471 = vmatprep.subr.mxu0 %v215_v16  ;;  %519 = vmatprep.subr.mxu1 %v215_v16 }
  0x1d   : > { %472 = vmatpush3.msra.mxu0 %v199_v17  ;;  %535 = vmatpush3.msra.mxu1 %v199_v17 }
  0x1e   : > { %473 = vmatprep.subr.mxu0 %v214_v18  ;;  %520 = vmatprep.subr.mxu1 %v214_v18 }
  0x1f   : > { %474 = vmatpush3.msra.mxu0 %v198_v19  ;;  %536 = vmatpush3.msra.mxu1 %v198_v19 }
  0x20   : > { %475 = vmatprep.subr.mxu0 %v213_v20  ;;  %521 = vmatprep.subr.mxu1 %v213_v20 }
  0x21   : > { %476 = vmatpush3.msra.mxu0 %v197_v21  ;;  %537 = vmatpush3.msra.mxu1 %v197_v21 }
  0x22   : > { %477 = vmatprep.subr.mxu0 %v212_v22  ;;  %522 = vmatprep.subr.mxu1 %v212_v22 }
  0x23   : > { %478 = vmatpush3.msra.mxu0 %v196_v23  ;;  %538 = vmatpush3.msra.mxu1 %v196_v23 }
  0x24   : > { %479 = vmatprep.subr.mxu0 %v211_v24  ;;  %523 = vmatprep.subr.mxu1 %v211_v24 }
  0x25   : > { %480 = vmatpush3.msra.mxu0 %v195_v25  ;;  %539 = vmatpush3.msra.mxu1 %v195_v25 }
  0x26   : > { %481 = vmatprep.subr.mxu0 %v210_v26  ;;  %524 = vmatprep.subr.mxu1 %v210_v26 }
  0x27   : > { %482 = vmatpush3.msra.mxu0 %v194_v27  ;;  %540 = vmatpush3.msra.mxu1 %v194_v27 }
  0x28   : > { %483 = vmatprep.subr.mxu0 %v209_v28  ;;  %525 = vmatprep.subr.mxu1 %v209_v28 }
  0x29   : > { %484 = vmatpush3.msra.mxu0 %v193_v29  ;;  %541 = vmatpush3.msra.mxu1 %v193_v29 }
  0x2a   : > { %485 = vmatprep.subr.mxu0 %v208_v30  ;;  %526 = vmatprep.subr.mxu1 %v208_v30 }
  0x2b   : > { %486 = vmatpush3.msra.mxu0 %v192_v31  ;;  %542 = vmatpush3.msra.mxu1 %v192_v31 }
  0x2c   : > { %443 = vmatprep.mubr.msk.f32.mxu0 %vm231_vm1, %v177_v32  ;;  %447 = vmatprep.mubr.msk.f32.mxu1 %vm231_vm1, %v185_v33 }
  0x2d   : > { %325 = vmatmul.mubr.f32.vlgmr.msra.gmra.mxu0 %v176_v34  ;;  %345 = vmatmul.mubr.f32.vlgmr.msra.gmra.mxu1 %v184_v35 }
  0x2e   : > { %444 = vmatprep.mubr.msk.f32.mxu0 %vm231_vm1, %v179_v36  ;;  %448 = vmatprep.mubr.msk.f32.mxu1 %vm231_vm1, %v187_v37 }
  0x31   : > { %330 = vmatmul.mubr.f32.gmra.mxu0 %v178_v38  ;;  %350 = vmatmul.mubr.f32.gmra.mxu1 %v186_v39 }
  0x32   : > { %445 = vmatprep.mubr.msk.f32.mxu0 %vm231_vm1, %v181_v40  ;;  %449 = vmatprep.mubr.msk.f32.mxu1 %vm231_vm1, %v189_v41 }
  0x35   : > { %335 = vmatmul.mubr.f32.gmra.mxu0 %v180_v42  ;;  %355 = vmatmul.mubr.f32.gmra.mxu1 %v188_v43 }
  0x36   : > { %446 = vmatprep.mubr.msk.f32.mxu0 %vm231_vm1, %v183_v44  ;;  %450 = vmatprep.mubr.msk.f32.mxu1 %vm231_vm1, %v191_v45 }
  0x39   : > { %340 = vmatmul.mubr.f32.gmra.mxu0 %v182_v46  ;;  %360 = vmatmul.mubr.f32.gmra.mxu1 %v190_v47 }
  0xed   : > { %v487_v48 = vpop.f32.mrf.mxu0  ;;  %v499_v49 = vpop.f32.mrf.mxu1 }
  0xef   : > { %v488_v50 = vpop.f32.mrf.mxu0  ;;  %v500_v51 = vpop.f32.mrf.mxu1 }
  0xf0   : > { %v489_v56 = vadd.f32 %v488_v50, %v487_v48  ;;  %v501_v60 = vadd.f32 %v500_v51, %v499_v49 }
  0xf1   : > { %v490_v52 = vpop.f32.mrf.mxu0  ;;  %v502_v53 = vpop.f32.mrf.mxu1 }
  0xf2   : > { %v327_v1 = vadd.f32 %v489_v56, %v441_v59  ;;  %v347_v5 = vadd.f32 %v501_v60, %v441_v59 }
  0xf3   : > { %v491_v54 = vpop.f32.mrf.mxu0  ;;  %v503_v55 = vpop.f32.mrf.mxu1 }
  0xf4   : > { %v492_v2 = vadd.f32 %v491_v54, %v490_v52  ;;  %v504_v6 = vadd.f32 %v503_v55, %v502_v53 }
  0xf5   : > { %v493_v57 = vpop.f32.mrf.mxu0  ;;  %v505_v58 = vpop.f32.mrf.mxu1 }
  0xf6   : > { %v332_v15 = vadd.f32 %v492_v2, %v441_v59  ;;  %v352_v16 = vadd.f32 %v504_v6, %v441_v59 }
  0xf7   : > { %v494_v61 = vpop.f32.mrf.mxu0  ;;  %v506_v62 = vpop.f32.mrf.mxu1 }
  0xf8   : > { %v495_v63 = vadd.f32 %v494_v61, %v493_v57  ;;  %v507_v0 = vadd.f32 %v506_v62, %v505_v58 }
  0xf9   : > { %v496_v3 = vpop.f32.mrf.mxu0  ;;  %v508_v4 = vpop.f32.mrf.mxu1 }
  0xfa   : > { %v337_v7 = vadd.f32 %v495_v63, %v441_v59  ;;  %v357_v8 = vadd.f32 %v507_v0, %v441_v59 }
  0xfb   : > { %v497_v9 = vpop.f32.mrf.mxu0  ;;  %v509_v10 = vpop.f32.mrf.mxu1 }
  0xfc   : > { %v365_v11 = vmax.f32 %v327_v1, %v337_v7  ;;  %v367_v12 = vmax.f32 %v347_v5, %v357_v8  ;;  %v498_v13 = vadd.f32 %v497_v9, %v496_v3  ;;  %v510_v14 = vadd.f32 %v509_v10, %v508_v4 }
  0xfe   : > { %v369_v17 = vmax.f32 %v365_v11, %v367_v12  ;;  %v342_v18 = vadd.f32 %v498_v13, %v441_v59  ;;  %v362_v19 = vadd.f32 %v510_v14, %v441_v59 }
 0x100   : > { %v371_v20 = vmax.f32 %v369_v17, 0.0  ;;  %v366_v21 = vmax.f32 %v332_v15, %v342_v18  ;;  %v368_v22 = vmax.f32 %v352_v16, %v362_v19 }
 0x102   : > { %374 = vst.msk [vmem:[%s175_s11] sm:$0xff] %vm373_vm2, %v371_v20  ;;  %v370_v23 = vmax.f32 %v366_v21, %v368_v22 }
 0x104   : > { %v372_v24 = vmax.f32 %v370_v23, 0.0 }
 0x106   : > { %375 = vst.msk [vmem:[%s175_s11 + $0x8] sm:$0xff] %vm373_vm2, %v372_v24 }
 0x107 PF: > { %s13_s12 = sadd.s32 1, %s557_s12  }
 0x108   : > { %p10_p5 = scmp.ge.s32.totalorder %s13_s12, 4  }
 0x10a   :  { %12 = sbr.rel (!%p10_p5) target bundleno = 1 (0x1), region = 62 }

// kernel: net_forward.5
= control target key start
LH: loop header
LB: loop body
LE: loop exit
PB: predicated region body
PF: predicated region fallthrough
CT: control target
= control target key end

     0   :  { %v476_v4 = vmov 0.0   ;;  %v477_v5 = vmov 1983009808   ;;  %v74_v7 = vlaneseq  ;;  %vm478_vm0 = vmmov 0   ;;  %s685_s0 = inlined_call_operand.vmem [shape: f32[2,320], index: 0, kind: input, shape index: {}]   ;;  %s686_s1 = inlined_call_operand.vmem [shape: f32[320,50], index: 1, kind: input, shape index: {}]   ;;  %s687_s2 = inlined_call_operand.vmem [shape: f32[1,50], index: 2, kind: input, shape index: {}]   ;;  %s688_s3 = inlined_call_operand.vmem [shape: f32[50,10], index: 3, kind: input, shape index: {}]   ;;  %s689_s4 = inlined_call_operand.vmem [shape: f32[1,10], index: 4, kind: input, shape index: {}]   ;;  %s690_s5 = inlined_call_operand.hbm [shape: f32[2,10], index: 5, kind: output, shape index: {}]  }
   0x1   :  { %v53_v0 = vld [vmem:[%s686_s1 + $0xf8] sm:$0xff]  ;;  %v52_v2 = vld [vmem:[%s686_s1 + $0xf0] sm:$0xff]  ;;  %409 = vmatprep.subr.mxu1 %v476_v4  ;;  %v72_v6 = vunpack.c.l.s4 %v477_v5  ;;  %v51_v8 = vld [vmem:[%s686_s1 + $0xe8] sm:$0xff]  ;;  %425 = vmatprep.mubr.msk.f32.mxu1 %vm478_vm0, %v476_v4 }
   0x2   :  { %v37_v1 = vld [vmem:[%s686_s1 + $0x78] sm:$0xff]  ;;  %357 = vmatprep.subr.mxu0 %v53_v0  ;;  %v36_v3 = vld [vmem:[%s686_s1 + $0x70] sm:$0xff]  ;;  %v35_v9 = vld [vmem:[%s686_s1 + $0x68] sm:$0xff]  ;;  %v75_v13 = vshrl.u32 %v74_v7, 7 }
   0x3   :  { %358 = vmatpush3.msra.mxu0 %v37_v1  ;;  %v50_v10 = vld [vmem:[%s686_s1 + $0xe0] sm:$0xff]  ;;  %v73_v12 = vunpack.c.0.s8 %v72_v6  ;;  %v49_v14 = vld [vmem:[%s686_s1 + $0xd8] sm:$0xff]  ;;  %v48_v17 = vld [vmem:[%s686_s1 + $0xd0] sm:$0xff] }
   0x4   :  { %359 = vmatprep.subr.mxu0 %v52_v2  ;;  %v34_v11 = vld [vmem:[%s686_s1 + $0x60] sm:$0xff]  ;;  %v33_v15 = vld [vmem:[%s686_s1 + $0x58] sm:$0xff]  ;;  %v60_v18 = vld [vmem:[%s686_s1 + $0x130] sm:$0xff] }
   0x5   :  { %360 = vmatpush3.msra.mxu0 %v36_v3  ;;  %v61_v16 = vld [vmem:[%s686_s1 + $0x138] sm:$0xff]  ;;  %v32_v19 = vld [vmem:[%s686_s1 + $0x50] sm:$0xff]  ;;  %v59_v20 = vld [vmem:[%s686_s1 + $0x128] sm:$0xff]  ;;  %v76_v21 = vsub.s32 %v73_v12, %v75_v13 }
   0x6   :  { %361 = vmatprep.subr.mxu0 %v51_v8  ;;  %410 = vmatpush3.msra.mxu1 %v61_v16  ;;  %v47_v22 = vld [vmem:[%s686_s1 + $0xc8] sm:$0xff]  ;;  %v58_v24 = vld [vmem:[%s686_s1 + $0x120] sm:$0xff]  ;;  %v57_v28 = vld [vmem:[%s686_s1 + $0x118] sm:$0xff] }
   0x7   :  { %362 = vmatpush3.msra.mxu0 %v35_v9  ;;  %411 = vmatprep.subr.mxu1 %v476_v4  ;;  %v31_v23 = vld [vmem:[%s686_s1 + $0x48] sm:$0xff]  ;;  %v46_v25 = vld [vmem:[%s686_s1 + $0xc0] sm:$0xff]  ;;  %v45_v30 = vld [vmem:[%s686_s1 + $0xb8] sm:$0xff] }
   0x8   :  { %363 = vmatprep.subr.mxu0 %v50_v10  ;;  %412 = vmatpush3.msra.mxu1 %v60_v18  ;;  %v21_v26 = vld [vmem:[%s685_s0] sm:$0x3f] }
   0x9   :  { %364 = vmatpush3.msra.mxu0 %v34_v11  ;;  %413 = vmatprep.subr.mxu1 %v476_v4  ;;  %v30_v27 = vld [vmem:[%s686_s1 + $0x40] sm:$0xff]  ;;  %v77_v29 = vrot.slane %v21_v26, %v76_v21 }
   0xa   :  { %365 = vmatprep.subr.mxu0 %v49_v14  ;;  %414 = vmatpush3.msra.mxu1 %v59_v20 }
   0xb   :  { %366 = vmatpush3.msra.mxu0 %v33_v15  ;;  %415 = vmatprep.subr.mxu1 %v476_v4 }
   0xc   :  { %367 = vmatprep.subr.mxu0 %v48_v17  ;;  %416 = vmatpush3.msra.mxu1 %v58_v24 }
   0xd   :  { %368 = vmatpush3.msra.mxu0 %v32_v19 }
   0xe   :  { %369 = vmatprep.subr.mxu0 %v47_v22 }
   0xf   :  { %370 = vmatpush3.msra.mxu0 %v31_v23 }
  0x10   :  { %10 = vsyncpa [#allocation3], 0  ;;  %371 = vmatprep.subr.mxu0 %v46_v25  ;;  %v29_v31 = vld [vmem:[%s686_s1 + $0x38] sm:$0xff]  ;;  %417 = vmatprep.subr.mxu1 %v476_v4  ;;  %v85_v32 = vcombine.high %v77_v29, %v77_v29  ;;  %v44_v33 = vld [vmem:[%s686_s1 + $0xb0] sm:$0xff]  ;;  %v70_v34 = vcombine.high %v21_v26, %v21_v26  ;;  %vm88_vm1 = vcmask 523264   ;;  %vm250_vm2 = vcmask 1041408  }
  0x11   :  { %372 = vmatpush3.msra.mxu0 %v30_v27  ;;  %418 = vmatpush3.msra.mxu1 %v57_v28  ;;  %v56_v35 = vld [vmem:[%s686_s1 + $0x110] sm:$0xff]  ;;  %v43_v37 = vld [vmem:[%s686_s1 + $0xa8] sm:$0xff]  ;;  %v42_v40 = vld [vmem:[%s686_s1 + $0xa0] sm:$0xff]  ;;  %vm246_vm3 = vcmask 408576   ;;  %vm324_vm4 = vcmask 74752  }
  0x12   :  { %373 = vmatprep.subr.mxu0 %v45_v30  ;;  %v28_v36 = vld [vmem:[%s686_s1 + $0x30] sm:$0xff]  ;;  %419 = vmatprep.subr.mxu1 %v476_v4  ;;  %v55_v38 = vld [vmem:[%s686_s1 + $0x108] sm:$0xff]  ;;  %v84_v41 = vrot.slane %v70_v34, %v76_v21  ;;  %v54_v42 = vld [vmem:[%s686_s1 + $0x100] sm:$0xff] }
  0x13   :  { %374 = vmatpush3.msra.mxu0 %v29_v31  ;;  %155 = vmatprep.mubr.f32.mxu0 %v85_v32  ;;  %v27_v39 = vld [vmem:[%s686_s1 + $0x28] sm:$0xff]  ;;  %v26_v43 = vld [vmem:[%s686_s1 + $0x20] sm:$0xff]  ;;  %v41_v44 = vld [vmem:[%s686_s1 + $0x98] sm:$0xff] }
  0x14   :  { %375 = vmatprep.subr.mxu0 %v44_v33  ;;  %420 = vmatpush3.msra.mxu1 %v56_v35  ;;  %v25_v45 = vld [vmem:[%s686_s1 + $0x18] sm:$0xff]  ;;  %v238_v46 = vld [vmem:[%s688_s3 + $0x30] sm:$0x3]  ;;  %v39_v49 = vld [vmem:[%s686_s1 + $0x88] sm:$0xff] }
  0x15   :  { %376 = vmatpush3.msra.mxu0 %v28_v36  ;;  %421 = vmatprep.subr.mxu1 %v476_v4  ;;  %v40_v47 = vld [vmem:[%s686_s1 + $0x90] sm:$0xff]  ;;  %v23_v50 = vld [vmem:[%s686_s1 + $0x8] sm:$0xff]  ;;  %v38_v51 = vld [vmem:[%s686_s1 + $0x80] sm:$0xff] }
  0x16   :  { %377 = vmatprep.subr.mxu0 %v43_v37  ;;  %422 = vmatpush3.msra.mxu1 %v55_v38  ;;  %v24_v48 = vld [vmem:[%s686_s1 + $0x10] sm:$0xff]  ;;  %v22_v52 = vld [vmem:[%s686_s1] sm:$0xff]  ;;  %v237_v53 = vld [vmem:[%s688_s3 + $0x28] sm:$0xff] }
  0x17   :  { %378 = vmatpush3.msra.mxu0 %v27_v39  ;;  %423 = vmatprep.subr.mxu1 %v476_v4  ;;  %v236_v54 = vld [vmem:[%s688_s3 + $0x20] sm:$0xff]  ;;  %v235_v55 = vld [vmem:[%s688_s3 + $0x18] sm:$0xff]  ;;  %v234_v56 = vld [vmem:[%s688_s3 + $0x10] sm:$0xff] }
  0x18   :  { %379 = vmatprep.subr.mxu0 %v42_v40  ;;  %424 = vmatpush3.msra.mxu1 %v54_v42  ;;  %v233_v57 = vld [vmem:[%s688_s3 + $0x8] sm:$0xff]  ;;  %v232_v58 = vld [vmem:[%s688_s3] sm:$0xff] }
  0x19   :  { %380 = vmatpush3.msra.mxu0 %v26_v43  ;;  %426 = vmatmul.mubr.msk.f32.vlgmr.msra.gmra.mxu1 %vm88_vm1, %v84_v41  ;;  %v352_v63 = vld [vmem:[%s687_s2] ss:$0 sm:$0xff]  ;;  %s479_s2 = smov [#allocation2]  }
  0x1a   :  { %381 = vmatprep.subr.mxu0 %v41_v44  ;;  %428 = vmatprep.subr.mxu1 %v476_v4  ;;  %s344_s3 = sshll.u32 %s479_s2, 4  ;;  %s345_s3 = int_to_ptr.vmem [resolvable:$true] %s344_s3 }
  0x1b   :  { %382 = vmatpush3.msra.mxu0 %v25_v45  ;;  %429 = vmatpush3.msk.msra.mxu1 %vm250_vm2, %v238_v46  ;;  %p459_p1 = scmp.lt.s32.totalorder %s345_s3, %s345_s3 }
  0x1c   :  { %383 = vmatprep.subr.mxu0 %v40_v47  ;;  %430 = vmatprep.subr.mxu1 %v476_v4 }
  0x1d   :  { %384 = vmatpush3.msra.mxu0 %v24_v48  ;;  %442 = vmatprep.mubr.msk.f32.mxu1 %vm478_vm0, %v476_v4 }
  0x1e   :  { %385 = vmatprep.subr.mxu0 %v39_v49  ;;  %431 = vmatpush3.msra.mxu1 %v237_v53 }
  0x1f   :  { %386 = vmatpush3.msra.mxu0 %v23_v50  ;;  %432 = vmatprep.subr.mxu1 %v476_v4 }
  0x20   :  { %387 = vmatprep.subr.mxu0 %v38_v51  ;;  %433 = vmatpush3.msra.mxu1 %v236_v54 }
  0x21   :  { %388 = vmatpush3.msra.mxu0 %v22_v52  ;;  %434 = vmatprep.subr.mxu1 %v476_v4 }
  0x22   :  { %156 = vmatmul.mubr.f32.vlgmr.msra.gmra.mxu0 %v77_v29  ;;  %435 = vmatpush3.msra.mxu1 %v235_v55 }
  0x23   :  { %436 = vmatprep.subr.mxu1 %v476_v4 }
  0x24   :  { %437 = vmatpush3.msra.mxu1 %v234_v56 }
  0x25   :  { %438 = vmatprep.subr.mxu1 %v476_v4 }
  0x26   :  { %439 = vmatpush3.msra.mxu1 %v233_v57 }
  0x27   :  { %440 = vmatprep.subr.mxu1 %v476_v4  ;;  %v354_v4 = vld [vmem:[%s689_s4] ss:$0 sm:$0xff]  ;;  %s454_s4 = scalar_lea.vmem %s345_s3, 32 }
  0x28   :  { %441 = vmatpush3.msra.mxu1 %v232_v58  ;;  %p455_p0 = scmp.ne.s32.totalorder %s345_s3, %s454_s4  ;;  %p460_p2 = scmp.lt.s32.totalorder %s454_s4, %s454_s4 }
  0x2a   :  { %p461_p3 = por %p460_p2, %p459_p1 }
  0x2c   :  { %p462_p4 = pnand %p461_p3, %p455_p0 }
  0xd9   :  { %v227_v59 = vpop.f32.mrf.mxu1 }
  0xdb   :  { %v427_v60 = vpop.f32.mrf.mxu1 }
  0xe2   :  { %v389_v61 = vpop.f32.mrf.mxu0 }
  0xe4   :  { %v390_v62 = vpop.f32.mrf.mxu0 }
  0xe5   :  { %v391_v0 = vadd.f32 %v390_v62, %v389_v61 }
  0xe7   :  { %v158_v1 = vadd.f32 %v391_v0, %v352_v63 }
  0xe9   :  { %v228_v2 = vadd.f32 %v227_v59, %v158_v1 }
  0xeb   :  { %v231_v3 = vmax.f32 %v228_v2, 0.0 }
  0xed   :  { %443 = vmatmul.mubr.msk.f32.vlgmr.msra.gmra.mxu1 %vm246_vm3, %v231_v3 }
 0x1ad   :  { %v320_v5 = vpop.f32.mrf.mxu1 }
 0x1ae   :  { %v321_v6 = vadd.f32 %v354_v4, %v320_v5 }
 0x1af   :  { %v444_v7 = vpop.f32.mrf.mxu1 }
 0x1b0   :  { %v325_v8 = vsel %vm324_vm4, %v321_v6, -inf }
 0x1b1   :  { %326 = vmax.xlane.f32.xlu0 %v325_v8 }
 0x23a   :  { %v327_v9 = vpop.xlane.xlu0 %326 }
 0x23b   :  { %v328_v10 = vsub.f32 %v321_v6, %v327_v9 }
 0x23d   :  { %v329_v11 = vmul.f32 1.442695, %v328_v10 }
 0x23f   :  { %450 = vpow2.f32 %v329_v11 }
 0x24c   :  { %v451_v12 = vpop.eup %450 }
 0x24d   :  { %v331_v13 = vsel %vm324_vm4, %v451_v12, 0.0 }
 0x24e   :  { %332 = vadd.xlane.f32.xlu0 %v331_v13 }
 0x2d7   :  { %v333_v14 = vpop.xlane.xlu0 %332 }
 0x2d8   :  { %452 = vlog2.f32 %v333_v14 }
 0x2e5   :  { %v453_v15 = vpop.eup %452 }
 0x2e6   :  { %v335_v16 = vmul.f32 0.6931472, %v453_v15 }
 0x2e8   :  { %v336_v17 = vsub.f32 %v328_v10, %v335_v16 }
 0x2ea   :  { %337 = vst.msk [vmem:[#allocation2] sm:$0x3] %vm324_vm4, %v336_v17 }
 0x2eb   :  { %465 = shalt.err (!%p462_p4)
}
 0x2ec   :  { %347 = dma.vmem_to_hbm [thread:$0]  %s345_s3, 32, %s690_s5, [#allocation3]  }
 0x2ed   :  { %474 = dma.done.wait [#allocation3], 32  }
 0x2ee   :  { %475 = vsyncadd [#allocation3], 4294967264 }
 0x2ef   :  { %351 = vsyncpa [#allocation3], 1 }

</bundles_post_ra>
